<compile_context>
chip_gen: v5e
topology: v5e:2x2
jax: 0.10.0
libtpu: 0.0.40
codegen_flags: <defaults>
</compile_context>

<pallas_src>
import functools

import jax
import jax.numpy as jnp
import numpy as np
from jax.experimental import pallas as pl
from jax.experimental.pallas import tpu as pltpu


def _multiscale_kernel(x_ref, w3_ref, w5_ref, sh3_ref, sh5_ref, out_ref,
                       xpad_ref, *, H, W, cout, halo):
    HW = H * W

    # Flat-padded copy of the image: `halo` zero lanes on each side absorb all
    # row over/under-flows of the shifted taps (column wrap is masked below).
    xpad_ref[...] = jnp.zeros(xpad_ref.shape, xpad_ref.dtype)
    xpad_ref[:, halo:halo + HW] = x_ref[0]

    # Column index of every flattened output position (to mask taps that would
    # otherwise alias the neighbouring row after the flat shift).
    lane = jax.lax.broadcasted_iota(jnp.int32, (1, HW), 1)
    col = (lane & (W - 1)) if (W & (W - 1)) == 0 else (lane % W)

    def branch(k, w_ref, sh_ref):
        p = k // 2
        pieces = []
        for dy in range(k):
            for dx in range(k):
                off = halo + (dy - p) * W + (dx - p)
                piece = xpad_ref[:, off:off + HW]          # (Cin, H*W)
                if dx != p:   # W-shifted taps can alias the neighbouring row
                    valid = (col >= p - dx) & (col < W + p - dx)
                    piece = jnp.where(valid, piece, jnp.zeros_like(piece))
                pieces.append(piece)
        # (k*k*Cin, H*W) bf16 patches -> single MXU matmul, f32 accumulation.
        patches = jnp.concatenate(pieces, axis=0).astype(jnp.bfloat16)
        acc = jnp.dot(w_ref[...], patches, preferred_element_type=jnp.float32)
        return jnp.maximum(acc + sh_ref[...], 0.0)          # (Cout, H*W) f32

    # branch2: 3x3 conv + BN + ReLU  -> first Cout channels (stored before the
    # 5x5 branch is computed to keep only one accumulator live).
    out_ref[0, :cout, :] = branch(3, w3_ref, sh3_ref).astype(out_ref.dtype)
    # branch3: 5x5 conv + BN + ReLU  -> last Cout channels.
    out_ref[0, cout:, :] = branch(5, w5_ref, sh5_ref).astype(out_ref.dtype)


def multi_scale_branch(x_nchw, params):
    """Forward pass of MultiScaleBranchModule. Input/output are NCHW float32."""
    w3, b3, g3, be3, m3, v3, w5, b5, g5, be5, m5, v5 = params
    eps = 1e-5
    B, cin, H, W = x_nchw.shape
    cout = w3.shape[0]
    HW = H * W
    halo = 2 * W + 2   # flat halo large enough for the 5x5 branch (pad=2)

    # Fold conv bias + BatchNorm into per-channel scale/shift; the scale goes
    # straight into the conv weights, only the shift stays in the kernel.
    s3 = g3 / jnp.sqrt(v3 + eps)
    sh3 = be3 + (b3 - m3) * s3
    s5 = g5 / jnp.sqrt(v5 + eps)
    sh5 = be5 + (b5 - m5) * s5

    def prep_w(w, s, k):
        # (Cout, Cin, kh, kw) -> BN-scale per out channel -> (Cout, kh*kw*Cin)
        # with column order (dy, dx, cin) matching the in-kernel patch order.
        wf = w * s[:, None, None, None]
        wf = jnp.transpose(wf, (0, 2, 3, 1)).reshape(cout, k * k * cin)
        return wf.astype(jnp.bfloat16)

    w3_r = prep_w(w3, s3, 3)
    w5_r = prep_w(w5, s5, 5)

    x_flat = x_nchw.reshape(B, cin, HW)   # free: stays NCHW-contiguous

    kernel = functools.partial(_multiscale_kernel, H=H, W=W, cout=cout, halo=halo)

    flops = 2 * B * HW * cout * cin * (9 + 25)
    bytes_accessed = (x_nchw.size * 4 + (w3_r.size + w5_r.size) * 2
                      + B * 2 * cout * HW * 4)

    out_flat = pl.pallas_call(
        kernel,
        out_shape=jax.ShapeDtypeStruct((B, 2 * cout, HW), x_nchw.dtype),
        grid_spec=pltpu.PrefetchScalarGridSpec(
            num_scalar_prefetch=0,
            grid=(B,),
            in_specs=[
                pl.BlockSpec((1, cin, HW), lambda b: (b, 0, 0)),
                pl.BlockSpec((cout, 9 * cin), lambda b: (0, 0)),
                pl.BlockSpec((cout, 25 * cin), lambda b: (0, 0)),
                pl.BlockSpec((cout, 1), lambda b: (0, 0)),
                pl.BlockSpec((cout, 1), lambda b: (0, 0)),
            ],
            out_specs=pl.BlockSpec((1, 2 * cout, HW), lambda b: (b, 0, 0)),
            scratch_shapes=[pltpu.VMEM((cin, HW + 2 * halo), jnp.float32)],
        ),
        compiler_params=pltpu.CompilerParams(dimension_semantics=("parallel",)),
        cost_estimate=pl.CostEstimate(flops=flops, transcendentals=0,
                                      bytes_accessed=bytes_accessed),
    )(x_flat, w3_r, w5_r, sh3.reshape(cout, 1), sh5.reshape(cout, 1))

    # (B, 2*Cout, H*W) -> (B, 2*Cout, H, W): free reshape, already NCHW order.
    return out_flat.reshape(B, 2 * cout, H, W)


def _reference(x_nchw, params):
    """Pure-JAX f32 reference (lax.conv), matching the PyTorch module."""
    w3, b3, g3, be3, m3, v3, w5, b5, g5, be5, m5, v5 = params
    eps = 1e-5

    def branch(x, w, b, g, be, m, v, pad):
        y = jax.lax.conv_general_dilated(
            x, w, window_strides=(1, 1), padding=((pad, pad), (pad, pad)),
            dimension_numbers=("NCHW", "OIHW", "NCHW"))
        y = y + b[None, :, None, None]
        y = (y - m[None, :, None, None]) / jnp.sqrt(v[None, :, None, None] + eps)
        y = y * g[None, :, None, None] + be[None, :, None, None]
        return jnp.maximum(y, 0.0)

    y3 = branch(x_nchw, w3, b3, g3, be3, m3, v3, 1)
    y5 = branch(x_nchw, w5, b5, g5, be5, m5, v5, 2)
    return jnp.concatenate([y3, y5], axis=1)


def _init_params(key, cin, cout):
    ks = jax.random.split(key, 12)
    w3 = jax.random.normal(ks[0], (cout, cin, 3, 3), jnp.float32) * 0.1
    b3 = jax.random.normal(ks[1], (cout,), jnp.float32) * 0.1
    g3 = 1.0 + 0.1 * jax.random.normal(ks[2], (cout,), jnp.float32)
    be3 = 0.1 * jax.random.normal(ks[3], (cout,), jnp.float32)
    m3 = 0.1 * jax.random.normal(ks[4], (cout,), jnp.float32)
    v3 = 1.0 + 0.1 * jax.random.uniform(ks[5], (cout,), jnp.float32)
    w5 = jax.random.normal(ks[6], (cout, cin, 5, 5), jnp.float32) * 0.1
    b5 = jax.random.normal(ks[7], (cout,), jnp.float32) * 0.1
    g5 = 1.0 + 0.1 * jax.random.normal(ks[8], (cout,), jnp.float32)
    be5 = 0.1 * jax.random.normal(ks[9], (cout,), jnp.float32)
    m5 = 0.1 * jax.random.normal(ks[10], (cout,), jnp.float32)
    v5 = 1.0 + 0.1 * jax.random.uniform(ks[11], (cout,), jnp.float32)
    return (w3, b3, g3, be3, m3, v3, w5, b5, g5, be5, m5, v5)


if __name__ == "__main__":
    key = jax.random.PRNGKey(0)
    k_x, k_p = jax.random.split(key)

    B, Cin, Cout, H, W = 2, 4, 8, 16, 16
    x = jax.random.normal(k_x, (B, Cin, H, W), jnp.float32)
    params = _init_params(k_p, Cin, Cout)

    out = multi_scale_branch(x, params)
    out = jax.block_until_ready(out)

    ref = jax.block_until_ready(_reference(x, params))
    assert out.shape == (B, 2 * Cout, H, W), out.shape
    # Tolerance reflects bf16 MXU operands (f32 accumulation) vs a pure-f32
    # reference; observed error is a few 1e-3 at these magnitudes.
    np.testing.assert_allclose(np.asarray(out), np.asarray(ref),
                               rtol=2e-2, atol=2e-2)

    print("KERNEL_OK")
</pallas_src>

<mosaic_0001>
module attributes {stable_mosaic.version = 11 : i64} {
  func.func @_multiscale_kernel(%arg0: i32, %arg1: memref<1x4x256xf32, #tpu.memory_space<vmem>>, %arg2: memref<8x36xbf16, #tpu.memory_space<vmem>>, %arg3: memref<8x100xbf16, #tpu.memory_space<vmem>>, %arg4: memref<8x1xf32, #tpu.memory_space<vmem>>, %arg5: memref<8x1xf32, #tpu.memory_space<vmem>>, %arg6: memref<1x16x256xf32, #tpu.memory_space<vmem>>, %arg7: memref<4x324xf32, #tpu.memory_space<vmem>>) attributes {dimension_semantics = [#tpu.dimension_semantics<parallel>], iteration_bounds = array<i64: 2>, scalar_prefetch = 0 : i64, scratch_operands = 1 : i64, tpu.core_type = #tpu.core_type<tc>, window_params = [{transform_indices = @transform_0, window_bounds = array<i64: 1, 4, 256>}, {pipeline_mode = #tpu.pipeline_mode<synchronous>, transform_indices = @transform_1, window_bounds = array<i64: 8, 36>}, {pipeline_mode = #tpu.pipeline_mode<synchronous>, transform_indices = @transform_2, window_bounds = array<i64: 8, 100>}, {pipeline_mode = #tpu.pipeline_mode<synchronous>, transform_indices = @transform_3, window_bounds = array<i64: 8, 1>}, {pipeline_mode = #tpu.pipeline_mode<synchronous>, transform_indices = @transform_4, window_bounds = array<i64: 8, 1>}, {transform_indices = @transform_5, window_bounds = array<i64: 1, 16, 256>}]} {
    %cst = arith.constant 0.000000e+00 : f32
    %0 = vector.broadcast %cst : f32 to vector<4x324xf32>
    %c0 = arith.constant 0 : index
    %c0_0 = arith.constant 0 : index
    %1 = vector.load %arg7[%c0, %c0_0] : memref<4x324xf32, #tpu.memory_space<vmem>>, vector<4x324xf32>
    tpu.vector_store %arg7[%c0, %c0_0], %0 {strides = array<i32>} : memref<4x324xf32, #tpu.memory_space<vmem>>, vector<4x324xf32>,
    %c0_1 = arith.constant 0 : index
    %c0_2 = arith.constant 0 : index
    %c0_3 = arith.constant 0 : index
    %2 = vector.load %arg1[%c0_1, %c0_2, %c0_3] : memref<1x4x256xf32, #tpu.memory_space<vmem>>, vector<1x4x256xf32>
    %3 = vector.shape_cast %2 : vector<1x4x256xf32> to vector<4x256xf32>
    %c0_4 = arith.constant 0 : index
    %c34 = arith.constant 34 : index
    %4 = vector.load %arg7[%c0_4, %c34] : memref<4x324xf32, #tpu.memory_space<vmem>>, vector<4x256xf32>
    tpu.vector_store %arg7[%c0_4, %c34], %3 {strides = array<i32>} : memref<4x324xf32, #tpu.memory_space<vmem>>, vector<4x256xf32>,
    %5 = tpu.iota {dimensions = array<i32: 1>} : vector<1x256xi32>
    %c15_i32 = arith.constant 15 : i32
    %6 = vector.broadcast %c15_i32 : i32 to vector<1x256xi32>
    %7 = arith.andi %5, %6 : vector<1x256xi32>
    %c0_5 = arith.constant 0 : index
    %c17 = arith.constant 17 : index
    %8 = vector.load %arg7[%c0_5, %c17] : memref<4x324xf32, #tpu.memory_space<vmem>>, vector<4x256xf32>
    %c1_i32 = arith.constant 1 : i32
    %9 = vector.broadcast %c1_i32 : i32 to vector<1x256xi32>
    %10 = arith.cmpi sge, %7, %9 : vector<1x256xi32>
    %c17_i32 = arith.constant 17 : i32
    %11 = vector.broadcast %c17_i32 : i32 to vector<1x256xi32>
    %12 = arith.cmpi slt, %7, %11 : vector<1x256xi32>
    %13 = arith.andi %10, %12 : vector<1x256xi1>
    %cst_6 = arith.constant 0.000000e+00 : f32
    %14 = vector.broadcast %cst_6 : f32 to vector<4x256xf32>
    %15 = vector.shape_cast %13 : vector<1x256xi1> to vector<1x256xi1>
    %16 = vector.broadcast %15 : vector<1x256xi1> to vector<4x256xi1>
    %17 = arith.select %16, %8, %14 : vector<4x256xi1>, vector<4x256xf32>
    %c0_7 = arith.constant 0 : index
    %c18 = arith.constant 18 : index
    %18 = vector.load %arg7[%c0_7, %c18] : memref<4x324xf32, #tpu.memory_space<vmem>>, vector<4x256xf32>
    %c0_8 = arith.constant 0 : index
    %c19 = arith.constant 19 : index
    %19 = vector.load %arg7[%c0_8, %c19] : memref<4x324xf32, #tpu.memory_space<vmem>>, vector<4x256xf32>
    %c-1_i32 = arith.constant -1 : i32
    %20 = vector.broadcast %c-1_i32 : i32 to vector<1x256xi32>
    %21 = arith.cmpi sge, %7, %20 : vector<1x256xi32>
    %c15_i32_9 = arith.constant 15 : i32
    %22 = vector.broadcast %c15_i32_9 : i32 to vector<1x256xi32>
    %23 = arith.cmpi slt, %7, %22 : vector<1x256xi32>
    %24 = arith.andi %21, %23 : vector<1x256xi1>
    %cst_10 = arith.constant 0.000000e+00 : f32
    %25 = vector.broadcast %cst_10 : f32 to vector<4x256xf32>
    %26 = vector.shape_cast %24 : vector<1x256xi1> to vector<1x256xi1>
    %27 = vector.broadcast %26 : vector<1x256xi1> to vector<4x256xi1>
    %28 = arith.select %27, %19, %25 : vector<4x256xi1>, vector<4x256xf32>
    %c0_11 = arith.constant 0 : index
    %c33 = arith.constant 33 : index
    %29 = vector.load %arg7[%c0_11, %c33] : memref<4x324xf32, #tpu.memory_space<vmem>>, vector<4x256xf32>
    %c1_i32_12 = arith.constant 1 : i32
    %30 = vector.broadcast %c1_i32_12 : i32 to vector<1x256xi32>
    %31 = arith.cmpi sge, %7, %30 : vector<1x256xi32>
    %c17_i32_13 = arith.constant 17 : i32
    %32 = vector.broadcast %c17_i32_13 : i32 to vector<1x256xi32>
    %33 = arith.cmpi slt, %7, %32 : vector<1x256xi32>
    %34 = arith.andi %31, %33 : vector<1x256xi1>
    %cst_14 = arith.constant 0.000000e+00 : f32
    %35 = vector.broadcast %cst_14 : f32 to vector<4x256xf32>
    %36 = vector.shape_cast %34 : vector<1x256xi1> to vector<1x256xi1>
    %37 = vector.broadcast %36 : vector<1x256xi1> to vector<4x256xi1>
    %38 = arith.select %37, %29, %35 : vector<4x256xi1>, vector<4x256xf32>
    %c0_15 = arith.constant 0 : index
    %c34_16 = arith.constant 34 : index
    %39 = vector.load %arg7[%c0_15, %c34_16] : memref<4x324xf32, #tpu.memory_space<vmem>>, vector<4x256xf32>
    %c0_17 = arith.constant 0 : index
    %c35 = arith.constant 35 : index
    %40 = vector.load %arg7[%c0_17, %c35] : memref<4x324xf32, #tpu.memory_space<vmem>>, vector<4x256xf32>
    %c-1_i32_18 = arith.constant -1 : i32
    %41 = vector.broadcast %c-1_i32_18 : i32 to vector<1x256xi32>
    %42 = arith.cmpi sge, %7, %41 : vector<1x256xi32>
    %c15_i32_19 = arith.constant 15 : i32
    %43 = vector.broadcast %c15_i32_19 : i32 to vector<1x256xi32>
    %44 = arith.cmpi slt, %7, %43 : vector<1x256xi32>
    %45 = arith.andi %42, %44 : vector<1x256xi1>
    %cst_20 = arith.constant 0.000000e+00 : f32
    %46 = vector.broadcast %cst_20 : f32 to vector<4x256xf32>
    %47 = vector.shape_cast %45 : vector<1x256xi1> to vector<1x256xi1>
    %48 = vector.broadcast %47 : vector<1x256xi1> to vector<4x256xi1>
    %49 = arith.select %48, %40, %46 : vector<4x256xi1>, vector<4x256xf32>
    %c0_21 = arith.constant 0 : index
    %c49 = arith.constant 49 : index
    %50 = vector.load %arg7[%c0_21, %c49] : memref<4x324xf32, #tpu.memory_space<vmem>>, vector<4x256xf32>
    %c1_i32_22 = arith.constant 1 : i32
    %51 = vector.broadcast %c1_i32_22 : i32 to vector<1x256xi32>
    %52 = arith.cmpi sge, %7, %51 : vector<1x256xi32>
    %c17_i32_23 = arith.constant 17 : i32
    %53 = vector.broadcast %c17_i32_23 : i32 to vector<1x256xi32>
    %54 = arith.cmpi slt, %7, %53 : vector<1x256xi32>
    %55 = arith.andi %52, %54 : vector<1x256xi1>
    %cst_24 = arith.constant 0.000000e+00 : f32
    %56 = vector.broadcast %cst_24 : f32 to vector<4x256xf32>
    %57 = vector.shape_cast %55 : vector<1x256xi1> to vector<1x256xi1>
    %58 = vector.broadcast %57 : vector<1x256xi1> to vector<4x256xi1>
    %59 = arith.select %58, %50, %56 : vector<4x256xi1>, vector<4x256xf32>
    %c0_25 = arith.constant 0 : index
    %c50 = arith.constant 50 : index
    %60 = vector.load %arg7[%c0_25, %c50] : memref<4x324xf32, #tpu.memory_space<vmem>>, vector<4x256xf32>
    %c0_26 = arith.constant 0 : index
    %c51 = arith.constant 51 : index
    %61 = vector.load %arg7[%c0_26, %c51] : memref<4x324xf32, #tpu.memory_space<vmem>>, vector<4x256xf32>
    %c-1_i32_27 = arith.constant -1 : i32
    %62 = vector.broadcast %c-1_i32_27 : i32 to vector<1x256xi32>
    %63 = arith.cmpi sge, %7, %62 : vector<1x256xi32>
    %c15_i32_28 = arith.constant 15 : i32
    %64 = vector.broadcast %c15_i32_28 : i32 to vector<1x256xi32>
    %65 = arith.cmpi slt, %7, %64 : vector<1x256xi32>
    %66 = arith.andi %63, %65 : vector<1x256xi1>
    %cst_29 = arith.constant 0.000000e+00 : f32
    %67 = vector.broadcast %cst_29 : f32 to vector<4x256xf32>
    %68 = vector.shape_cast %66 : vector<1x256xi1> to vector<1x256xi1>
    %69 = vector.broadcast %68 : vector<1x256xi1> to vector<4x256xi1>
    %70 = arith.select %69, %61, %67 : vector<4x256xi1>, vector<4x256xf32>
    %71 = tpu.concatenate %17, %18, %28, %38, %39, %49, %59, %60, %70 in 0 : vector<4x256xf32>, vector<4x256xf32>, vector<4x256xf32>, vector<4x256xf32>, vector<4x256xf32>, vector<4x256xf32>, vector<4x256xf32>, vector<4x256xf32>, vector<4x256xf32> -> vector<36x256xf32>
    %72 = arith.truncf %71 : vector<36x256xf32> to vector<36x256xbf16>
    %c0_30 = arith.constant 0 : index
    %c0_31 = arith.constant 0 : index
    %73 = vector.load %arg2[%c0_30, %c0_31] : memref<8x36xbf16, #tpu.memory_space<vmem>>, vector<8x36xbf16>
    %cst_32 = arith.constant dense<0.000000e+00> : vector<8x256xf32>
    %74 = tpu.matmul %73, %72, %cst_32 {dimension_numbers = #tpu.dot_dimension_numbers<[1], [0], [0], [1], [0, 0, 1, 1], [], []>} : vector<8x36xbf16>, vector<36x256xbf16>, vector<8x256xf32> -> vector<8x256xf32>
    %c0_33 = arith.constant 0 : index
    %c0_34 = arith.constant 0 : index
    %75 = vector.load %arg4[%c0_33, %c0_34] : memref<8x1xf32, #tpu.memory_space<vmem>>, vector<8x1xf32>
    %76 = vector.broadcast %75 : vector<8x1xf32> to vector<8x256xf32>
    %77 = arith.addf %74, %76 : vector<8x256xf32>
    %cst_35 = arith.constant 0.000000e+00 : f32
    %78 = vector.broadcast %cst_35 : f32 to vector<8x256xf32>
    %79 = arith.maximumf %77, %78 : vector<8x256xf32>
    %c0_36 = arith.constant 0 : index
    %c0_37 = arith.constant 0 : index
    %c0_38 = arith.constant 0 : index
    %80 = vector.load %arg6[%c0_36, %c0_37, %c0_38] : memref<1x16x256xf32, #tpu.memory_space<vmem>>, vector<1x8x256xf32>
    %81 = vector.shape_cast %80 : vector<1x8x256xf32> to vector<8x256xf32>
    %82 = vector.shape_cast %79 : vector<8x256xf32> to vector<1x8x256xf32>
    tpu.vector_store %arg6[%c0_36, %c0_37, %c0_38], %82 {strides = array<i32>} : memref<1x16x256xf32, #tpu.memory_space<vmem>>, vector<1x8x256xf32>,
    %c0_39 = arith.constant 0 : index
    %c0_40 = arith.constant 0 : index
    %83 = vector.load %arg7[%c0_39, %c0_40] : memref<4x324xf32, #tpu.memory_space<vmem>>, vector<4x256xf32>
    %c2_i32 = arith.constant 2 : i32
    %84 = vector.broadcast %c2_i32 : i32 to vector<1x256xi32>
    %85 = arith.cmpi sge, %7, %84 : vector<1x256xi32>
    %c18_i32 = arith.constant 18 : i32
    %86 = vector.broadcast %c18_i32 : i32 to vector<1x256xi32>
    %87 = arith.cmpi slt, %7, %86 : vector<1x256xi32>
    %88 = arith.andi %85, %87 : vector<1x256xi1>
    %cst_41 = arith.constant 0.000000e+00 : f32
    %89 = vector.broadcast %cst_41 : f32 to vector<4x256xf32>
    %90 = vector.shape_cast %88 : vector<1x256xi1> to vector<1x256xi1>
    %91 = vector.broadcast %90 : vector<1x256xi1> to vector<4x256xi1>
    %92 = arith.select %91, %83, %89 : vector<4x256xi1>, vector<4x256xf32>
    %c0_42 = arith.constant 0 : index
    %c1 = arith.constant 1 : index
    %93 = vector.load %arg7[%c0_42, %c1] : memref<4x324xf32, #tpu.memory_space<vmem>>, vector<4x256xf32>
    %c1_i32_43 = arith.constant 1 : i32
    %94 = vector.broadcast %c1_i32_43 : i32 to vector<1x256xi32>
    %95 = arith.cmpi sge, %7, %94 : vector<1x256xi32>
    %c17_i32_44 = arith.constant 17 : i32
    %96 = vector.broadcast %c17_i32_44 : i32 to vector<1x256xi32>
    %97 = arith.cmpi slt, %7, %96 : vector<1x256xi32>
    %98 = arith.andi %95, %97 : vector<1x256xi1>
    %cst_45 = arith.constant 0.000000e+00 : f32
    %99 = vector.broadcast %cst_45 : f32 to vector<4x256xf32>
    %100 = vector.shape_cast %98 : vector<1x256xi1> to vector<1x256xi1>
    %101 = vector.broadcast %100 : vector<1x256xi1> to vector<4x256xi1>
    %102 = arith.select %101, %93, %99 : vector<4x256xi1>, vector<4x256xf32>
    %c0_46 = arith.constant 0 : index
    %c2 = arith.constant 2 : index
    %103 = vector.load %arg7[%c0_46, %c2] : memref<4x324xf32, #tpu.memory_space<vmem>>, vector<4x256xf32>
    %c0_47 = arith.constant 0 : index
    %c3 = arith.constant 3 : index
    %104 = vector.load %arg7[%c0_47, %c3] : memref<4x324xf32, #tpu.memory_space<vmem>>, vector<4x256xf32>
    %c-1_i32_48 = arith.constant -1 : i32
    %105 = vector.broadcast %c-1_i32_48 : i32 to vector<1x256xi32>
    %106 = arith.cmpi sge, %7, %105 : vector<1x256xi32>
    %c15_i32_49 = arith.constant 15 : i32
    %107 = vector.broadcast %c15_i32_49 : i32 to vector<1x256xi32>
    %108 = arith.cmpi slt, %7, %107 : vector<1x256xi32>
    %109 = arith.andi %106, %108 : vector<1x256xi1>
    %cst_50 = arith.constant 0.000000e+00 : f32
    %110 = vector.broadcast %cst_50 : f32 to vector<4x256xf32>
    %111 = vector.shape_cast %109 : vector<1x256xi1> to vector<1x256xi1>
    %112 = vector.broadcast %111 : vector<1x256xi1> to vector<4x256xi1>
    %113 = arith.select %112, %104, %110 : vector<4x256xi1>, vector<4x256xf32>
    %c0_51 = arith.constant 0 : index
    %c4 = arith.constant 4 : index
    %114 = vector.load %arg7[%c0_51, %c4] : memref<4x324xf32, #tpu.memory_space<vmem>>, vector<4x256xf32>
    %c-2_i32 = arith.constant -2 : i32
    %115 = vector.broadcast %c-2_i32 : i32 to vector<1x256xi32>
    %116 = arith.cmpi sge, %7, %115 : vector<1x256xi32>
    %c14_i32 = arith.constant 14 : i32
    %117 = vector.broadcast %c14_i32 : i32 to vector<1x256xi32>
    %118 = arith.cmpi slt, %7, %117 : vector<1x256xi32>
    %119 = arith.andi %116, %118 : vector<1x256xi1>
    %cst_52 = arith.constant 0.000000e+00 : f32
    %120 = vector.broadcast %cst_52 : f32 to vector<4x256xf32>
    %121 = vector.shape_cast %119 : vector<1x256xi1> to vector<1x256xi1>
    %122 = vector.broadcast %121 : vector<1x256xi1> to vector<4x256xi1>
    %123 = arith.select %122, %114, %120 : vector<4x256xi1>, vector<4x256xf32>
    %c0_53 = arith.constant 0 : index
    %c16 = arith.constant 16 : index
    %124 = vector.load %arg7[%c0_53, %c16] : memref<4x324xf32, #tpu.memory_space<vmem>>, vector<4x256xf32>
    %c2_i32_54 = arith.constant 2 : i32
    %125 = vector.broadcast %c2_i32_54 : i32 to vector<1x256xi32>
    %126 = arith.cmpi sge, %7, %125 : vector<1x256xi32>
    %c18_i32_55 = arith.constant 18 : i32
    %127 = vector.broadcast %c18_i32_55 : i32 to vector<1x256xi32>
    %128 = arith.cmpi slt, %7, %127 : vector<1x256xi32>
    %129 = arith.andi %126, %128 : vector<1x256xi1>
    %cst_56 = arith.constant 0.000000e+00 : f32
    %130 = vector.broadcast %cst_56 : f32 to vector<4x256xf32>
    %131 = vector.shape_cast %129 : vector<1x256xi1> to vector<1x256xi1>
    %132 = vector.broadcast %131 : vector<1x256xi1> to vector<4x256xi1>
    %133 = arith.select %132, %124, %130 : vector<4x256xi1>, vector<4x256xf32>
    %c0_57 = arith.constant 0 : index
    %c17_58 = arith.constant 17 : index
    %134 = vector.load %arg7[%c0_57, %c17_58] : memref<4x324xf32, #tpu.memory_space<vmem>>, vector<4x256xf32>
    %c1_i32_59 = arith.constant 1 : i32
    %135 = vector.broadcast %c1_i32_59 : i32 to vector<1x256xi32>
    %136 = arith.cmpi sge, %7, %135 : vector<1x256xi32>
    %c17_i32_60 = arith.constant 17 : i32
    %137 = vector.broadcast %c17_i32_60 : i32 to vector<1x256xi32>
    %138 = arith.cmpi slt, %7, %137 : vector<1x256xi32>
    %139 = arith.andi %136, %138 : vector<1x256xi1>
    %cst_61 = arith.constant 0.000000e+00 : f32
    %140 = vector.broadcast %cst_61 : f32 to vector<4x256xf32>
    %141 = vector.shape_cast %139 : vector<1x256xi1> to vector<1x256xi1>
    %142 = vector.broadcast %141 : vector<1x256xi1> to vector<4x256xi1>
    %143 = arith.select %142, %134, %140 : vector<4x256xi1>, vector<4x256xf32>
    %c0_62 = arith.constant 0 : index
    %c18_63 = arith.constant 18 : index
    %144 = vector.load %arg7[%c0_62, %c18_63] : memref<4x324xf32, #tpu.memory_space<vmem>>, vector<4x256xf32>
    %c0_64 = arith.constant 0 : index
    %c19_65 = arith.constant 19 : index
    %145 = vector.load %arg7[%c0_64, %c19_65] : memref<4x324xf32, #tpu.memory_space<vmem>>, vector<4x256xf32>
    %c-1_i32_66 = arith.constant -1 : i32
    %146 = vector.broadcast %c-1_i32_66 : i32 to vector<1x256xi32>
    %147 = arith.cmpi sge, %7, %146 : vector<1x256xi32>
    %c15_i32_67 = arith.constant 15 : i32
    %148 = vector.broadcast %c15_i32_67 : i32 to vector<1x256xi32>
    %149 = arith.cmpi slt, %7, %148 : vector<1x256xi32>
    %150 = arith.andi %147, %149 : vector<1x256xi1>
    %cst_68 = arith.constant 0.000000e+00 : f32
    %151 = vector.broadcast %cst_68 : f32 to vector<4x256xf32>
    %152 = vector.shape_cast %150 : vector<1x256xi1> to vector<1x256xi1>
    %153 = vector.broadcast %152 : vector<1x256xi1> to vector<4x256xi1>
    %154 = arith.select %153, %145, %151 : vector<4x256xi1>, vector<4x256xf32>
    %c0_69 = arith.constant 0 : index
    %c20 = arith.constant 20 : index
    %155 = vector.load %arg7[%c0_69, %c20] : memref<4x324xf32, #tpu.memory_space<vmem>>, vector<4x256xf32>
    %c-2_i32_70 = arith.constant -2 : i32
    %156 = vector.broadcast %c-2_i32_70 : i32 to vector<1x256xi32>
    %157 = arith.cmpi sge, %7, %156 : vector<1x256xi32>
    %c14_i32_71 = arith.constant 14 : i32
    %158 = vector.broadcast %c14_i32_71 : i32 to vector<1x256xi32>
    %159 = arith.cmpi slt, %7, %158 : vector<1x256xi32>
    %160 = arith.andi %157, %159 : vector<1x256xi1>
    %cst_72 = arith.constant 0.000000e+00 : f32
    %161 = vector.broadcast %cst_72 : f32 to vector<4x256xf32>
    %162 = vector.shape_cast %160 : vector<1x256xi1> to vector<1x256xi1>
    %163 = vector.broadcast %162 : vector<1x256xi1> to vector<4x256xi1>
    %164 = arith.select %163, %155, %161 : vector<4x256xi1>, vector<4x256xf32>
    %c0_73 = arith.constant 0 : index
    %c32 = arith.constant 32 : index
    %165 = vector.load %arg7[%c0_73, %c32] : memref<4x324xf32, #tpu.memory_space<vmem>>, vector<4x256xf32>
    %c2_i32_74 = arith.constant 2 : i32
    %166 = vector.broadcast %c2_i32_74 : i32 to vector<1x256xi32>
    %167 = arith.cmpi sge, %7, %166 : vector<1x256xi32>
    %c18_i32_75 = arith.constant 18 : i32
    %168 = vector.broadcast %c18_i32_75 : i32 to vector<1x256xi32>
    %169 = arith.cmpi slt, %7, %168 : vector<1x256xi32>
    %170 = arith.andi %167, %169 : vector<1x256xi1>
    %cst_76 = arith.constant 0.000000e+00 : f32
    %171 = vector.broadcast %cst_76 : f32 to vector<4x256xf32>
    %172 = vector.shape_cast %170 : vector<1x256xi1> to vector<1x256xi1>
    %173 = vector.broadcast %172 : vector<1x256xi1> to vector<4x256xi1>
    %174 = arith.select %173, %165, %171 : vector<4x256xi1>, vector<4x256xf32>
    %c0_77 = arith.constant 0 : index
    %c33_78 = arith.constant 33 : index
    %175 = vector.load %arg7[%c0_77, %c33_78] : memref<4x324xf32, #tpu.memory_space<vmem>>, vector<4x256xf32>
    %c1_i32_79 = arith.constant 1 : i32
    %176 = vector.broadcast %c1_i32_79 : i32 to vector<1x256xi32>
    %177 = arith.cmpi sge, %7, %176 : vector<1x256xi32>
    %c17_i32_80 = arith.constant 17 : i32
    %178 = vector.broadcast %c17_i32_80 : i32 to vector<1x256xi32>
    %179 = arith.cmpi slt, %7, %178 : vector<1x256xi32>
    %180 = arith.andi %177, %179 : vector<1x256xi1>
    %cst_81 = arith.constant 0.000000e+00 : f32
    %181 = vector.broadcast %cst_81 : f32 to vector<4x256xf32>
    %182 = vector.shape_cast %180 : vector<1x256xi1> to vector<1x256xi1>
    %183 = vector.broadcast %182 : vector<1x256xi1> to vector<4x256xi1>
    %184 = arith.select %183, %175, %181 : vector<4x256xi1>, vector<4x256xf32>
    %c0_82 = arith.constant 0 : index
    %c34_83 = arith.constant 34 : index
    %185 = vector.load %arg7[%c0_82, %c34_83] : memref<4x324xf32, #tpu.memory_space<vmem>>, vector<4x256xf32>
    %c0_84 = arith.constant 0 : index
    %c35_85 = arith.constant 35 : index
    %186 = vector.load %arg7[%c0_84, %c35_85] : memref<4x324xf32, #tpu.memory_space<vmem>>, vector<4x256xf32>
    %c-1_i32_86 = arith.constant -1 : i32
    %187 = vector.broadcast %c-1_i32_86 : i32 to vector<1x256xi32>
    %188 = arith.cmpi sge, %7, %187 : vector<1x256xi32>
    %c15_i32_87 = arith.constant 15 : i32
    %189 = vector.broadcast %c15_i32_87 : i32 to vector<1x256xi32>
    %190 = arith.cmpi slt, %7, %189 : vector<1x256xi32>
    %191 = arith.andi %188, %190 : vector<1x256xi1>
    %cst_88 = arith.constant 0.000000e+00 : f32
    %192 = vector.broadcast %cst_88 : f32 to vector<4x256xf32>
    %193 = vector.shape_cast %191 : vector<1x256xi1> to vector<1x256xi1>
    %194 = vector.broadcast %193 : vector<1x256xi1> to vector<4x256xi1>
    %195 = arith.select %194, %186, %192 : vector<4x256xi1>, vector<4x256xf32>
    %c0_89 = arith.constant 0 : index
    %c36 = arith.constant 36 : index
    %196 = vector.load %arg7[%c0_89, %c36] : memref<4x324xf32, #tpu.memory_space<vmem>>, vector<4x256xf32>
    %c-2_i32_90 = arith.constant -2 : i32
    %197 = vector.broadcast %c-2_i32_90 : i32 to vector<1x256xi32>
    %198 = arith.cmpi sge, %7, %197 : vector<1x256xi32>
    %c14_i32_91 = arith.constant 14 : i32
    %199 = vector.broadcast %c14_i32_91 : i32 to vector<1x256xi32>
    %200 = arith.cmpi slt, %7, %199 : vector<1x256xi32>
    %201 = arith.andi %198, %200 : vector<1x256xi1>
    %cst_92 = arith.constant 0.000000e+00 : f32
    %202 = vector.broadcast %cst_92 : f32 to vector<4x256xf32>
    %203 = vector.shape_cast %201 : vector<1x256xi1> to vector<1x256xi1>
    %204 = vector.broadcast %203 : vector<1x256xi1> to vector<4x256xi1>
    %205 = arith.select %204, %196, %202 : vector<4x256xi1>, vector<4x256xf32>
    %c0_93 = arith.constant 0 : index
    %c48 = arith.constant 48 : index
    %206 = vector.load %arg7[%c0_93, %c48] : memref<4x324xf32, #tpu.memory_space<vmem>>, vector<4x256xf32>
    %c2_i32_94 = arith.constant 2 : i32
    %207 = vector.broadcast %c2_i32_94 : i32 to vector<1x256xi32>
    %208 = arith.cmpi sge, %7, %207 : vector<1x256xi32>
    %c18_i32_95 = arith.constant 18 : i32
    %209 = vector.broadcast %c18_i32_95 : i32 to vector<1x256xi32>
    %210 = arith.cmpi slt, %7, %209 : vector<1x256xi32>
    %211 = arith.andi %208, %210 : vector<1x256xi1>
    %cst_96 = arith.constant 0.000000e+00 : f32
    %212 = vector.broadcast %cst_96 : f32 to vector<4x256xf32>
    %213 = vector.shape_cast %211 : vector<1x256xi1> to vector<1x256xi1>
    %214 = vector.broadcast %213 : vector<1x256xi1> to vector<4x256xi1>
    %215 = arith.select %214, %206, %212 : vector<4x256xi1>, vector<4x256xf32>
    %c0_97 = arith.constant 0 : index
    %c49_98 = arith.constant 49 : index
    %216 = vector.load %arg7[%c0_97, %c49_98] : memref<4x324xf32, #tpu.memory_space<vmem>>, vector<4x256xf32>
    %c1_i32_99 = arith.constant 1 : i32
    %217 = vector.broadcast %c1_i32_99 : i32 to vector<1x256xi32>
    %218 = arith.cmpi sge, %7, %217 : vector<1x256xi32>
    %c17_i32_100 = arith.constant 17 : i32
    %219 = vector.broadcast %c17_i32_100 : i32 to vector<1x256xi32>
    %220 = arith.cmpi slt, %7, %219 : vector<1x256xi32>
    %221 = arith.andi %218, %220 : vector<1x256xi1>
    %cst_101 = arith.constant 0.000000e+00 : f32
    %222 = vector.broadcast %cst_101 : f32 to vector<4x256xf32>
    %223 = vector.shape_cast %221 : vector<1x256xi1> to vector<1x256xi1>
    %224 = vector.broadcast %223 : vector<1x256xi1> to vector<4x256xi1>
    %225 = arith.select %224, %216, %222 : vector<4x256xi1>, vector<4x256xf32>
    %c0_102 = arith.constant 0 : index
    %c50_103 = arith.constant 50 : index
    %226 = vector.load %arg7[%c0_102, %c50_103] : memref<4x324xf32, #tpu.memory_space<vmem>>, vector<4x256xf32>
    %c0_104 = arith.constant 0 : index
    %c51_105 = arith.constant 51 : index
    %227 = vector.load %arg7[%c0_104, %c51_105] : memref<4x324xf32, #tpu.memory_space<vmem>>, vector<4x256xf32>
    %c-1_i32_106 = arith.constant -1 : i32
    %228 = vector.broadcast %c-1_i32_106 : i32 to vector<1x256xi32>
    %229 = arith.cmpi sge, %7, %228 : vector<1x256xi32>
    %c15_i32_107 = arith.constant 15 : i32
    %230 = vector.broadcast %c15_i32_107 : i32 to vector<1x256xi32>
    %231 = arith.cmpi slt, %7, %230 : vector<1x256xi32>
    %232 = arith.andi %229, %231 : vector<1x256xi1>
    %cst_108 = arith.constant 0.000000e+00 : f32
    %233 = vector.broadcast %cst_108 : f32 to vector<4x256xf32>
    %234 = vector.shape_cast %232 : vector<1x256xi1> to vector<1x256xi1>
    %235 = vector.broadcast %234 : vector<1x256xi1> to vector<4x256xi1>
    %236 = arith.select %235, %227, %233 : vector<4x256xi1>, vector<4x256xf32>
    %c0_109 = arith.constant 0 : index
    %c52 = arith.constant 52 : index
    %237 = vector.load %arg7[%c0_109, %c52] : memref<4x324xf32, #tpu.memory_space<vmem>>, vector<4x256xf32>
    %c-2_i32_110 = arith.constant -2 : i32
    %238 = vector.broadcast %c-2_i32_110 : i32 to vector<1x256xi32>
    %239 = arith.cmpi sge, %7, %238 : vector<1x256xi32>
    %c14_i32_111 = arith.constant 14 : i32
    %240 = vector.broadcast %c14_i32_111 : i32 to vector<1x256xi32>
    %241 = arith.cmpi slt, %7, %240 : vector<1x256xi32>
    %242 = arith.andi %239, %241 : vector<1x256xi1>
    %cst_112 = arith.constant 0.000000e+00 : f32
    %243 = vector.broadcast %cst_112 : f32 to vector<4x256xf32>
    %244 = vector.shape_cast %242 : vector<1x256xi1> to vector<1x256xi1>
    %245 = vector.broadcast %244 : vector<1x256xi1> to vector<4x256xi1>
    %246 = arith.select %245, %237, %243 : vector<4x256xi1>, vector<4x256xf32>
    %c0_113 = arith.constant 0 : index
    %c64 = arith.constant 64 : index
    %247 = vector.load %arg7[%c0_113, %c64] : memref<4x324xf32, #tpu.memory_space<vmem>>, vector<4x256xf32>
    %c2_i32_114 = arith.constant 2 : i32
    %248 = vector.broadcast %c2_i32_114 : i32 to vector<1x256xi32>
    %249 = arith.cmpi sge, %7, %248 : vector<1x256xi32>
    %c18_i32_115 = arith.constant 18 : i32
    %250 = vector.broadcast %c18_i32_115 : i32 to vector<1x256xi32>
    %251 = arith.cmpi slt, %7, %250 : vector<1x256xi32>
    %252 = arith.andi %249, %251 : vector<1x256xi1>
    %cst_116 = arith.constant 0.000000e+00 : f32
    %253 = vector.broadcast %cst_116 : f32 to vector<4x256xf32>
    %254 = vector.shape_cast %252 : vector<1x256xi1> to vector<1x256xi1>
    %255 = vector.broadcast %254 : vector<1x256xi1> to vector<4x256xi1>
    %256 = arith.select %255, %247, %253 : vector<4x256xi1>, vector<4x256xf32>
    %c0_117 = arith.constant 0 : index
    %c65 = arith.constant 65 : index
    %257 = vector.load %arg7[%c0_117, %c65] : memref<4x324xf32, #tpu.memory_space<vmem>>, vector<4x256xf32>
    %c1_i32_118 = arith.constant 1 : i32
    %258 = vector.broadcast %c1_i32_118 : i32 to vector<1x256xi32>
    %259 = arith.cmpi sge, %7, %258 : vector<1x256xi32>
    %c17_i32_119 = arith.constant 17 : i32
    %260 = vector.broadcast %c17_i32_119 : i32 to vector<1x256xi32>
    %261 = arith.cmpi slt, %7, %260 : vector<1x256xi32>
    %262 = arith.andi %259, %261 : vector<1x256xi1>
    %cst_120 = arith.constant 0.000000e+00 : f32
    %263 = vector.broadcast %cst_120 : f32 to vector<4x256xf32>
    %264 = vector.shape_cast %262 : vector<1x256xi1> to vector<1x256xi1>
    %265 = vector.broadcast %264 : vector<1x256xi1> to vector<4x256xi1>
    %266 = arith.select %265, %257, %263 : vector<4x256xi1>, vector<4x256xf32>
    %c0_121 = arith.constant 0 : index
    %c66 = arith.constant 66 : index
    %267 = vector.load %arg7[%c0_121, %c66] : memref<4x324xf32, #tpu.memory_space<vmem>>, vector<4x256xf32>
    %c0_122 = arith.constant 0 : index
    %c67 = arith.constant 67 : index
    %268 = vector.load %arg7[%c0_122, %c67] : memref<4x324xf32, #tpu.memory_space<vmem>>, vector<4x256xf32>
    %c-1_i32_123 = arith.constant -1 : i32
    %269 = vector.broadcast %c-1_i32_123 : i32 to vector<1x256xi32>
    %270 = arith.cmpi sge, %7, %269 : vector<1x256xi32>
    %c15_i32_124 = arith.constant 15 : i32
    %271 = vector.broadcast %c15_i32_124 : i32 to vector<1x256xi32>
    %272 = arith.cmpi slt, %7, %271 : vector<1x256xi32>
    %273 = arith.andi %270, %272 : vector<1x256xi1>
    %cst_125 = arith.constant 0.000000e+00 : f32
    %274 = vector.broadcast %cst_125 : f32 to vector<4x256xf32>
    %275 = vector.shape_cast %273 : vector<1x256xi1> to vector<1x256xi1>
    %276 = vector.broadcast %275 : vector<1x256xi1> to vector<4x256xi1>
    %277 = arith.select %276, %268, %274 : vector<4x256xi1>, vector<4x256xf32>
    %c0_126 = arith.constant 0 : index
    %c68 = arith.constant 68 : index
    %278 = vector.load %arg7[%c0_126, %c68] : memref<4x324xf32, #tpu.memory_space<vmem>>, vector<4x256xf32>
    %c-2_i32_127 = arith.constant -2 : i32
    %279 = vector.broadcast %c-2_i32_127 : i32 to vector<1x256xi32>
    %280 = arith.cmpi sge, %7, %279 : vector<1x256xi32>
    %c14_i32_128 = arith.constant 14 : i32
    %281 = vector.broadcast %c14_i32_128 : i32 to vector<1x256xi32>
    %282 = arith.cmpi slt, %7, %281 : vector<1x256xi32>
    %283 = arith.andi %280, %282 : vector<1x256xi1>
    %cst_129 = arith.constant 0.000000e+00 : f32
    %284 = vector.broadcast %cst_129 : f32 to vector<4x256xf32>
    %285 = vector.shape_cast %283 : vector<1x256xi1> to vector<1x256xi1>
    %286 = vector.broadcast %285 : vector<1x256xi1> to vector<4x256xi1>
    %287 = arith.select %286, %278, %284 : vector<4x256xi1>, vector<4x256xf32>
    %288 = tpu.concatenate %92, %102, %103, %113, %123, %133, %143, %144, %154, %164, %174, %184, %185, %195, %205, %215 in 0 : vector<4x256xf32>, vector<4x256xf32>, vector<4x256xf32>, vector<4x256xf32>, vector<4x256xf32>, vector<4x256xf32>, vector<4x256xf32>, vector<4x256xf32>, vector<4x256xf32>, vector<4x256xf32>, vector<4x256xf32>, vector<4x256xf32>, vector<4x256xf32>, vector<4x256xf32>, vector<4x256xf32>, vector<4x256xf32> -> vector<64x256xf32>
    %289 = tpu.concatenate %225, %226, %236, %246, %256, %266, %267, %277, %287 in 0 : vector<4x256xf32>, vector<4x256xf32>, vector<4x256xf32>, vector<4x256xf32>, vector<4x256xf32>, vector<4x256xf32>, vector<4x256xf32>, vector<4x256xf32>, vector<4x256xf32> -> vector<36x256xf32>
    %290 = tpu.concatenate %288, %289 in 0 : vector<64x256xf32>, vector<36x256xf32> -> vector<100x256xf32>
    %291 = arith.truncf %290 : vector<100x256xf32> to vector<100x256xbf16>
    %c0_130 = arith.constant 0 : index
    %c0_131 = arith.constant 0 : index
    %292 = vector.load %arg3[%c0_130, %c0_131] : memref<8x100xbf16, #tpu.memory_space<vmem>>, vector<8x100xbf16>
    %cst_132 = arith.constant dense<0.000000e+00> : vector<8x256xf32>
    %293 = tpu.matmul %292, %291, %cst_132 {dimension_numbers = #tpu.dot_dimension_numbers<[1], [0], [0], [1], [0, 0, 1, 1], [], []>} : vector<8x100xbf16>, vector<100x256xbf16>, vector<8x256xf32> -> vector<8x256xf32>
    %c0_133 = arith.constant 0 : index
    %c0_134 = arith.constant 0 : index
    %294 = vector.load %arg5[%c0_133, %c0_134] : memref<8x1xf32, #tpu.memory_space<vmem>>, vector<8x1xf32>
    %295 = vector.broadcast %294 : vector<8x1xf32> to vector<8x256xf32>
    %296 = arith.addf %293, %295 : vector<8x256xf32>
    %cst_135 = arith.constant 0.000000e+00 : f32
    %297 = vector.broadcast %cst_135 : f32 to vector<8x256xf32>
    %298 = arith.maximumf %296, %297 : vector<8x256xf32>
    %c0_136 = arith.constant 0 : index
    %c8 = arith.constant 8 : index
    %c0_137 = arith.constant 0 : index
    %299 = vector.load %arg6[%c0_136, %c8, %c0_137] : memref<1x16x256xf32, #tpu.memory_space<vmem>>, vector<1x8x256xf32>
    %300 = vector.shape_cast %299 : vector<1x8x256xf32> to vector<8x256xf32>
    %301 = vector.shape_cast %298 : vector<8x256xf32> to vector<1x8x256xf32>
    tpu.vector_store %arg6[%c0_136, %c8, %c0_137], %301 {strides = array<i32>} : memref<1x16x256xf32, #tpu.memory_space<vmem>>, vector<1x8x256xf32>,
    return
  }
  func.func @transform_0(%arg0: i32) -> (i32, i32, i32) {
    %c0_i32 = arith.constant 0 : i32
    %c0_i32_0 = arith.constant 0 : i32
    %c0_i32_1 = arith.constant 0 : i32
    return %arg0, %c0_i32, %c0_i32_0 : i32, i32, i32
  }
  func.func @transform_1(%arg0: i32) -> (i32, i32) {
    %c0_i32 = arith.constant 0 : i32
    %c0_i32_0 = arith.constant 0 : i32
    %c0_i32_1 = arith.constant 0 : i32
    return %c0_i32, %c0_i32_0 : i32, i32
  }
  func.func @transform_2(%arg0: i32) -> (i32, i32) {
    %c0_i32 = arith.constant 0 : i32
    %c0_i32_0 = arith.constant 0 : i32
    %c0_i32_1 = arith.constant 0 : i32
    return %c0_i32, %c0_i32_0 : i32, i32
  }
  func.func @transform_3(%arg0: i32) -> (i32, i32) {
    %c0_i32 = arith.constant 0 : i32
    %c0_i32_0 = arith.constant 0 : i32
    %c0_i32_1 = arith.constant 0 : i32
    return %c0_i32, %c0_i32_0 : i32, i32
  }
  func.func @transform_4(%arg0: i32) -> (i32, i32) {
    %c0_i32 = arith.constant 0 : i32
    %c0_i32_0 = arith.constant 0 : i32
    %c0_i32_1 = arith.constant 0 : i32
    return %c0_i32, %c0_i32_0 : i32, i32
  }
  func.func @transform_5(%arg0: i32) -> (i32, i32, i32) {
    %c0_i32 = arith.constant 0 : i32
    %c0_i32_0 = arith.constant 0 : i32
    %c0_i32_1 = arith.constant 0 : i32
    return %arg0, %c0_i32, %c0_i32_0 : i32, i32, i32
  }
}

</mosaic_0001>

<bundles_post_ra>
// kernel: tpu_custom_call.1
= control target key start
LH: loop header
LB: loop body
LE: loop exit
PB: predicated region body
PF: predicated region fallthrough
CT: control target
= control target key end

     0   :  { %10 = vsyncpa [#allocation4], 0  ;;  %s2618_s0 = inlined_call_operand.vmem [shape: f32[2,4,256], index: 0, kind: input, shape index: {}]   ;;  %s2619_s1 = inlined_call_operand.hbm [shape: bf16[8,36], index: 1, kind: input, shape index: {}]   ;;  %s2620_s2 = inlined_call_operand.hbm [shape: bf16[8,100], index: 2, kind: input, shape index: {}]   ;;  %s2621_s3 = inlined_call_operand.vmem [shape: f32[8,1], index: 3, kind: input, shape index: {}]   ;;  %s2622_s4 = inlined_call_operand.vmem [shape: f32[8,1], index: 4, kind: input, shape index: {}]   ;;  %s2623_s5 = inlined_call_operand.hbm [shape: f32[2,16,256], index: 5, kind: output, shape index: {}]  }
   0x1   :  { %11 = vsyncpa [#allocation7], 0 }
   0x2   :  { %12 = vsyncpa [#allocation5], 0 }
   0x3   :  { %14 = vsyncpa [#allocation5 + $0x1], 0  ;;  %s1869_s18 = smov 0   ;;  %s1871_s19 = smov 0  }
   0x4   :  { %s1873_s20 = smov 0   ;;  %s1875_s21 = smov 0  }
   0x5 LB: > { %s1890_s22 = sadd.s32 4294967295, %s1806_s21   ;;  %s1352_s23 = sadd.s32 4294967294, %s1806_s21   ;;  %s1806_s21 = sphi %s1875_s21, %s2662_s21   ;;  %s1802_s20 = sphi %s1873_s20, %s2661_s20   ;;  %s1798_s19 = sphi %s1871_s19, %s2660_s19   ;;  %s1794_s18 = sphi %s1869_s18, %s2659_s18  }
   0x6   : > { %s1894_s24 = sadd.s32 1, %s1806_s21   ;;  %s137_s25 = sadd.s32 1, %s1802_s20 }
   0x7   : > { %s134_s26 = ssub.s32 %s1806_s21, %s1894_s24  ;;  %p147_p0 = scmp.ne.s32.totalorder %s1802_s20, %s1798_s19 }
   0x8   : > { %p135_p1 = scmp.eq.s32.totalorder %s134_s26, 0  ;;  %p148_p2 = scmp.eq.s32.totalorder %s1890_s22, 1 }
   0x9   : > { %p153_p3 = scmp.ne.s32.totalorder %s1798_s19, %s1794_s18  ;;  %p154_p4 = scmp.eq.s32.totalorder %s1352_s23, 1 }
   0xa   : > { %s1905_s27 = scalar_select %p135_p1, %s1802_s20, %s137_s25  }
   0xb   : > { %p1907_p5 = por %p148_p2, %p147_p0  ;;  %p1911_p6 = por %p154_p4, %p153_p3 }
   0xc   : > { %p1353_p7 = scmp.ge.s32.totalorder %s1806_s21, 1  ;;  %p161_p8 = scmp.lt.s32.totalorder %s1806_s21, 3 }
   0xd   : > { %p1395_p9 = scmp.eq.s32.totalorder %s1890_s22, 0  ;;  %s173_s8 = sshll.u32 %s2619_s1, 4  ;;  %s174_s8 = int_to_ptr.hbm [resolvable:$true] %s173_s8 }
   0xe   : > { %p1918_p10 = pnand %p1353_p7, %p161_p8  ;;  %s1808_s9 = smov [#allocation3]  }
   0xf   : > { %s175_s10 = sshll.u32 %s1808_s9, 4  ;;  %s185_s13 = sshll.u32 %s2620_s2, 4  ;;  %s176_s10 = int_to_ptr.vmem [resolvable:$true] %s175_s10  ;;  %s186_s13 = int_to_ptr.hbm [resolvable:$true] %s185_s13 }
  0x10   : > { %p1384_p11 = pneg %p1918_p10  ;;  %s1809_s14 = smov [#allocation6]  }
  0x11   : > { %s187_s15 = sshll.u32 %s1809_s14, 4  ;;  %214 = sbr.rel (%p1918_p10) target bundleno = 727 (0x2d7), region = 40  ;;  %s188_s15 = int_to_ptr.vmem [resolvable:$true] %s187_s15 }
  0x12   : > { %p1385_p12 = pnand %p1395_p9, %p1384_p11 }
  0x14   : > { %1387 = dma.hbm_to_vmem [thread:$0]  (!%p1385_p12), %s174_s8, 64, %s176_s10, [#allocation4]  }
  0x15   : > { %1390 = dma.hbm_to_vmem [thread:$0]  (!%p1385_p12), %s186_s13, 64, %s188_s15, [#allocation7]  }
  0x16   : > { %1781 = dma.done.wait (%p1395_p9), [#allocation4], 64  }
  0x17   : > { %1783 = vsyncadd (%p1395_p9), [#allocation4], 4294967232 }
  0x18   : > { %1785 = dma.done.wait (%p1395_p9), [#allocation7], 64  }
  0x19   : > { %1787 = vsyncadd (%p1395_p9), [#allocation7], 4294967232  ;;  %p248_p13 = scmp.lt.s32.totalorder %s1890_s22, 1  ;;  %vm255_vm0 = vcmask 551936   ;;  %v1810_v0 = vmov 0.0   ;;  %s1811_s30 = smov 34  }
  0x1a   : > { %254 = vst [vmem:[#allocation2] sm:$0xff] %v1810_v0  ;;  %vm266_vm1 = vcmask 1043728   ;;  %vm267_vm2 = vcmask 1047556   ;;  %vm262_vm3 = vcmask 277504   ;;  %vm270_vm4 = vcmask 273408   ;;  %v516_v4 = vld [vmem:[%s2621_s3] sm:$0xff] }
  0x1b   : > { %s249_s16 = scalar_select %p248_p13, %s1890_s22, 1  ;;  %256 = vst.msk [vmem:[#allocation2 + $0x8] sm:$0xf] %vm255_vm0, %v1810_v0  ;;  %v1812_v3 = vmov 0   ;;  %vm268_vm5 = vmor %vm267_vm2, %vm266_vm1  ;;  %vm428_vm6 = vcmask 629760   ;;  %vm526_vm8 = vcmask 1041408  }
  0x1c   : > { %1463 = vset.pattern.permute.xlu1 %v1812_v3  ;;  %1674 = vset.pattern.permute.xlu2 %v1812_v3  ;;  %s1813_s8 = smov 111   ;;  %s1814_s9 = smov 109   ;;  %vm382_vm9 = vcmask 760832   ;;  %vm359_vm10 = vcmask 777216   ;;  %vm303_vm12 = vcmask 908288   ;;  %vm336_vm13 = vcmask 891904  }
  0x1d   : > { %s1372_s17 = sshll.u32 %s249_s16, 3  ;;  %519 = vperm.xlu1 %1463, %v516_v4   ;;  %1675 = vset.pattern.permute.xlu0 %v1812_v3  ;;  %s1815_s10 = smov 95   ;;  %vm405_vm14 = vcmask 646144   ;;  %vm2626_vm15 = vcmask 637952   ;;  %vm2632_vm0 = vcmask 769024   ;;  %vm500_vm1 = vcmask 1043456  }
  0x1e   : > { %s252_s26 = scalar_lea.vmem %s2618_s0, %s1372_s17  ;;  %s1816_s11 = smov 93   ;;  %vm448_vm2 = vcmask 900096  }
  0x1f   : > { %v257_v1 = vld [vmem:[%s252_s26] sm:$0xff]  ;;  %s1817_s12 = smov 79   ;;  %s1818_s13 = smov 77  }
  0x20   : > { %259 = vrot.lane.b32.xlu0 %v257_v1, %s1811_s30  ;;  %s1819_s14 = smov 110   ;;  %s1820_s15 = smov 94  }
  0x21   : > { %s1821_s16 = smov 78   ;;  %s1822_s17 = smov 127  }
  0x22   : > { %s1823_s23 = smov 125   ;;  %s1824_s25 = smov 108  }
  0x23   : > { %s1825_s26 = smov 96   ;;  %s1826_s30 = smov 92  }
  0x24   : > { %s1827_s6 = smov 80   ;;  %s1828_s7 = smov 76  }
  0x92   : > { %v260_v2 = vpop.permute.xlu0 %259 }
  0x93   : > { %v261_v5 = vrot.slane %v260_v2, 4 }
  0x95   : > { %v263_v6 = vsel %vm262_vm3, %v261_v5, %v260_v2  ;;  %271 = vst.msk [vmem:[#allocation2 + $0x8] sm:$0xf] %vm270_vm4, %v261_v5  ;;  %vm2624_vm3 = vcmask 293888   ;;  %vm2625_vm4 = vcmask 1039360  }
  0x96   : > { %269 = vst.msk [vmem:[#allocation2] sm:$0xff] %vm268_vm5, %v263_v6  ;;  %vm744_vm5 = vcmask 883712  }
  0x9c   : > { %v278_v7 = vld [vmem:[#allocation2 + $0x8] sm:$0xf] }
  0x9d   : > { %v1950_v8 = vld [vmem:[#allocation2] sm:$0xff]  ;;  %293 = vst [vmem:[#allocation1 + $0x10] ss:$2 sm:$0xff] %v278_v7  ;;  %v311_v12 = vld [vmem:[#allocation2 + $0x8] sm:$0xf] }
  0x9e   : > { %291 = vst [vmem:[#allocation1] ss:$2 sm:$0xff] %v1950_v8  ;;  %v344_v14 = vld [vmem:[#allocation2 + $0x8] sm:$0xf] }
  0x9f   : > { %v367_v19 = vld [vmem:[#allocation2 + $0x8] sm:$0xf] }
  0xa0   : > { %v390_v24 = vld [vmem:[#allocation2 + $0x8] sm:$0xf] }
  0xa1   : > { %v413_v29 = vld [vmem:[#allocation2 + $0x8] sm:$0xf] }
  0xa2   : > { %v583_v46 = vld [vmem:[#allocation2 + $0x8] sm:$0xf] }
  0xa3   : > { %v1989_v51 = vld [vmem:[#allocation2 + $0x8] sm:$0xf] }
  0xa4   : > { %v1953_v9 = vld.sshfl [vmem:[#allocation1 + $0x10] sm:$0xff pattern:$0x75316420] }
  0xa5   : > { %v294_v10 = vld.sshfl [vmem:[#allocation1] sm:$0xff pattern:$0x75316420]  ;;  %v295_v11 = vld.sshfl [vmem:[#allocation1 + $0x8] sm:$0xff pattern:$0x75316420] }
  0xa6   : > { %324 = vst [vmem:[#allocation1] ss:$2 sm:$0xff] %v1950_v8  ;;  %v1464_v13 = vpack.i.bf16 %v295_v11, %v294_v10  ;;  %v629_v55 = vld [vmem:[#allocation2 + $0x8] sm:$0xf] }
  0xa7   : > { %326 = vst [vmem:[#allocation1 + $0x10] ss:$2 sm:$0xff] %v311_v12  ;;  %v662_v60 = vld [vmem:[#allocation2 + $0x8] sm:$0xf] }
  0xa8   : > { %1465 = vrot.lane.b32.xlu0 %v1464_v13, %s1813_s8  ;;  %v685_v1 = vld [vmem:[#allocation2 + $0x8] sm:$0xf] }
  0xa9   : > { %v2011_v5 = vld [vmem:[#allocation2 + $0x8] sm:$0xf] }
  0xaa   : > { %v729_v11 = vld [vmem:[#allocation2 + $0x8] sm:$0xf] }
  0xad   : > { %v327_v15 = vld.sshfl [vmem:[#allocation1] sm:$0xff pattern:$0x75316420]  ;;  %v328_v16 = vld.sshfl [vmem:[#allocation1 + $0x8] sm:$0xff pattern:$0x75316420] }
  0xae   : > { %v1957_v17 = vld.sshfl [vmem:[#allocation1 + $0x10] sm:$0xff pattern:$0x75316420]  ;;  %347 = vst [vmem:[#allocation1] ss:$2 sm:$0xff] %v1950_v8  ;;  %v1469_v18 = vpack.i.bf16 %v328_v16, %v327_v15 }
  0xaf   : > { %349 = vst [vmem:[#allocation1 + $0x10] ss:$2 sm:$0xff] %v344_v14  ;;  %v752_v16 = vld [vmem:[#allocation2 + $0x8] sm:$0xf] }
  0xb0   : > { %1470 = vrot.lane.b32.xlu1 %v1469_v18, %s1814_s9 }
  0xb5   : > { %v350_v20 = vld.sshfl [vmem:[#allocation1] sm:$0xff pattern:$0x75316420]  ;;  %v351_v21 = vld.sshfl [vmem:[#allocation1 + $0x8] sm:$0xff pattern:$0x75316420] }
  0xb6   : > { %v1961_v22 = vld.sshfl [vmem:[#allocation1 + $0x10] sm:$0xff pattern:$0x75316420]  ;;  %370 = vst [vmem:[#allocation1] ss:$2 sm:$0xff] %v1950_v8  ;;  %v1474_v23 = vpack.i.bf16 %v351_v21, %v350_v20 }
  0xb7   : > { %372 = vst [vmem:[#allocation1 + $0x10] ss:$2 sm:$0xff] %v367_v19 }
  0xb8   : > { %1475 = vrot.lane.b32.xlu2 %v1474_v23, %s1815_s10 }
  0xbd   : > { %v373_v25 = vld.sshfl [vmem:[#allocation1] sm:$0xff pattern:$0x75316420]  ;;  %v374_v26 = vld.sshfl [vmem:[#allocation1 + $0x8] sm:$0xff pattern:$0x75316420] }
  0xbe   : > { %v1965_v27 = vld.sshfl [vmem:[#allocation1 + $0x10] sm:$0xff pattern:$0x75316420]  ;;  %393 = vst [vmem:[#allocation1] ss:$2 sm:$0xff] %v1950_v8  ;;  %v1479_v28 = vpack.i.bf16 %v374_v26, %v373_v25 }
  0xbf   : > { %395 = vst [vmem:[#allocation1 + $0x10] ss:$2 sm:$0xff] %v390_v24  ;;  %v272_v24 = vlaneseq }
  0xc0   : > { %1480 = vrot.lane.b32.xlu1 %v1479_v28, %s1816_s11 }
  0xc5   : > { %v396_v30 = vld.sshfl [vmem:[#allocation1] sm:$0xff pattern:$0x75316420]  ;;  %v397_v31 = vld.sshfl [vmem:[#allocation1 + $0x8] sm:$0xff pattern:$0x75316420] }
  0xc6   : > { %v1969_v32 = vld.sshfl [vmem:[#allocation1 + $0x10] sm:$0xff pattern:$0x75316420]  ;;  %416 = vst [vmem:[#allocation1] ss:$2 sm:$0xff] %v1950_v8  ;;  %v1484_v33 = vpack.i.bf16 %v397_v31, %v396_v30 }
  0xc7   : > { %418 = vst [vmem:[#allocation1 + $0x10] ss:$2 sm:$0xff] %v413_v29 }
  0xc8   : > { %1485 = vrot.lane.b32.xlu0 %v1484_v33, %s1817_s12 }
  0xcd   : > { %v419_v34 = vld.sshfl [vmem:[#allocation1] sm:$0xff pattern:$0x75316420]  ;;  %v420_v35 = vld.sshfl [vmem:[#allocation1 + $0x8] sm:$0xff pattern:$0x75316420] }
  0xce   : > { %v1973_v36 = vld.sshfl [vmem:[#allocation1 + $0x10] sm:$0xff pattern:$0x75316420]  ;;  %436 = vst [vmem:[#allocation1 + $0x1] ss:$2 sm:$0xff] %v1950_v8  ;;  %v1489_v37 = vpack.i.bf16 %v420_v35, %v419_v34 }
  0xcf   : > { %438 = vst [vmem:[#allocation1 + $0x11] ss:$2 sm:$0xff] %v311_v12  ;;  %v2043_v35 = vld [vmem:[#allocation2 + $0x8] sm:$0xf] }
  0xd0   : > { %1490 = vrot.lane.b32.xlu2 %v1489_v37, %s1818_s13 }
  0xd5   : > { %v439_v38 = vld.sshfl [vmem:[#allocation1] sm:$0xff pattern:$0x75316420]  ;;  %v440_v39 = vld.sshfl [vmem:[#allocation1 + $0x8] sm:$0xff pattern:$0x75316420] }
  0xd6   : > { %v1977_v40 = vld.sshfl [vmem:[#allocation1 + $0x10] sm:$0xff pattern:$0x75316420]  ;;  %459 = vst [vmem:[#allocation1] ss:$2 sm:$0xff] %v1950_v8  ;;  %v1494_v41 = vpack.i.bf16 %v440_v39, %v439_v38 }
  0xd7   : > { %461 = vst [vmem:[#allocation1 + $0x10] ss:$2 sm:$0xff] %v367_v19 }
  0xd8   : > { %1495 = vrot.lane.b32.xlu1 %v1494_v41, %s1819_s14 }
  0xdd   : > { %v462_v42 = vld.sshfl [vmem:[#allocation1] sm:$0xff pattern:$0x75316420]  ;;  %v463_v43 = vld.sshfl [vmem:[#allocation1 + $0x8] sm:$0xff pattern:$0x75316420] }
  0xde   : > { %v1981_v44 = vld.sshfl [vmem:[#allocation1 + $0x10] sm:$0xff pattern:$0x75316420]  ;;  %483 = vst [vmem:[#allocation1 + $0x1] ss:$2 sm:$0xff] %v1950_v8  ;;  %v1499_v45 = vpack.i.bf16 %v463_v43, %v462_v42 }
  0xdf   : > { %485 = vst [vmem:[#allocation1 + $0x11] ss:$2 sm:$0xff] %v413_v29 }
  0xe0   : > { %1500 = vrot.lane.b32.xlu0 %v1499_v45, %s1820_s15 }
  0xe5   : > { %v486_v47 = vld.sshfl [vmem:[#allocation1] sm:$0xff pattern:$0x75316420]  ;;  %v487_v48 = vld.sshfl [vmem:[#allocation1 + $0x8] sm:$0xff pattern:$0x75316420] }
  0xe6   : > { %v1985_v49 = vld.sshfl [vmem:[#allocation1 + $0x10] sm:$0xff pattern:$0x75316420]  ;;  %575 = vst [vmem:[#allocation1] ss:$2 sm:$0xff] %v1950_v8  ;;  %v1504_v50 = vpack.i.bf16 %v487_v48, %v486_v47 }
  0xe7   : > { %588 = vst [vmem:[#allocation1 + $0x10] ss:$2 sm:$0xff] %v583_v46  ;;  %v819_v48 = vld [vmem:[#allocation2 + $0x8] sm:$0xf] }
  0xe8   : > { %1505 = vrot.lane.b32.xlu2 %v1504_v50, %s1821_s16  ;;  %v2055_v50 = vpop.permute.xlu1 %519 }
  0xed   : > { %v1991_v52 = vld.sshfl [vmem:[#allocation1] sm:$0xff pattern:$0x75316420]  ;;  %v1993_v53 = vld.sshfl [vmem:[#allocation1 + $0x8] sm:$0xff pattern:$0x75316420] }
  0xee   : > { %586 = vst [vmem:[#allocation1] ss:$2 sm:$0xff] %v1950_v8  ;;  %v591_v54 = vld.sshfl [vmem:[#allocation1 + $0x10] sm:$0xff pattern:$0x75316420] }
  0xef   : > { %611 = vst [vmem:[#allocation1 + $0x10] ss:$2 sm:$0xff] %v1989_v51  ;;  %596 = vrot.lane.b32.xlu0 %v591_v54, %s1822_s17 }
  0xf5   : > { %v589_v56 = vld.sshfl [vmem:[#allocation1] sm:$0xff pattern:$0x75316420]  ;;  %v590_v57 = vld.sshfl [vmem:[#allocation1 + $0x8] sm:$0xff pattern:$0x75316420] }
  0xf6   : > { %609 = vst [vmem:[#allocation1] ss:$2 sm:$0xff] %v1950_v8  ;;  %v1998_v58 = vld.sshfl [vmem:[#allocation1 + $0x10] sm:$0xff pattern:$0x75316420]  ;;  %v1509_v59 = vpack.i.bf16 %v590_v57, %v589_v56 }
  0xf7   : > { %644 = vst [vmem:[#allocation1 + $0x10] ss:$2 sm:$0xff] %v629_v55 }
  0xf8   : > { %1510 = vrot.lane.b32.xlu2 %v1509_v59, %s1822_s17  ;;  %s1834_s17 = smov 62  }
  0xfd   : > { %v612_v61 = vld.sshfl [vmem:[#allocation1] sm:$0xff pattern:$0x75316420]  ;;  %v613_v62 = vld.sshfl [vmem:[#allocation1 + $0x8] sm:$0xff pattern:$0x75316420] }
  0xfe   : > { %642 = vst [vmem:[#allocation1] ss:$2 sm:$0xff] %v1950_v8  ;;  %v2001_v63 = vld.sshfl [vmem:[#allocation1 + $0x10] sm:$0xff pattern:$0x75316420]  ;;  %v1514_v0 = vpack.i.bf16 %v613_v62, %v612_v61 }
  0xff   : > { %667 = vst [vmem:[#allocation1 + $0x10] ss:$2 sm:$0xff] %v662_v60  ;;  %v842_v60 = vld [vmem:[#allocation2 + $0x8] sm:$0xf] }
 0x100   : > { %1515 = vrot.lane.b32.xlu1 %v1514_v0, %s1823_s23 }
 0x105   : > { %v2004_v2 = vld.sshfl [vmem:[#allocation1] sm:$0xff pattern:$0x75316420]  ;;  %v2006_v3 = vld.sshfl [vmem:[#allocation1 + $0x8] sm:$0xff pattern:$0x75316420] }
 0x106   : > { %665 = vst [vmem:[#allocation1] ss:$2 sm:$0xff] %v1950_v8  ;;  %v2009_v4 = vld.sshfl [vmem:[#allocation1 + $0x10] sm:$0xff pattern:$0x75316420] }
 0x107   : > { %690 = vst [vmem:[#allocation1 + $0x10] ss:$2 sm:$0xff] %v685_v1 }
 0x10d   : > { %v2013_v6 = vld.sshfl [vmem:[#allocation1] sm:$0xff pattern:$0x75316420]  ;;  %v2015_v7 = vld.sshfl [vmem:[#allocation1 + $0x8] sm:$0xff pattern:$0x75316420] }
 0x10e   : > { %688 = vst [vmem:[#allocation1] ss:$2 sm:$0xff] %v1950_v8  ;;  %v2018_v10 = vld.sshfl [vmem:[#allocation1 + $0x10] sm:$0xff pattern:$0x75316420] }
 0x10f   : > { %712 = vst [vmem:[#allocation1 + $0x10] ss:$2 sm:$0xff] %v2011_v5 }
 0x112   : > { %v2030_v23 = vpop.permute.xlu2 %1475 }
 0x115   : > { %v691_v12 = vld.sshfl [vmem:[#allocation1] sm:$0xff pattern:$0x75316420]  ;;  %v2021_v13 = vld.sshfl [vmem:[#allocation1 + $0x8] sm:$0xff pattern:$0x75316420] }
 0x116   : > { %710 = vst [vmem:[#allocation1] ss:$2 sm:$0xff] %v1950_v8  ;;  %v715_v14 = vld.sshfl [vmem:[#allocation1 + $0x10] sm:$0xff pattern:$0x75316420]  ;;  %v1519_v15 = vpack.i.bf16 %v691_v12, %v1953_v9 }
 0x117   : > { %734 = vst [vmem:[#allocation1 + $0x10] ss:$2 sm:$0xff] %v729_v11  ;;  %v775_v9 = vld [vmem:[#allocation2 + $0x8] sm:$0xf] }
 0x118   : > { %1520 = vrot.lane.b32.xlu1 %v1519_v15, %s1813_s8  ;;  %v865_v12 = vld [vmem:[#allocation2 + $0x8] sm:$0xf] }
 0x11d   : > { %v713_v18 = vld.sshfl [vmem:[#allocation1] sm:$0xff pattern:$0x75316420]  ;;  %v714_v19 = vld.sshfl [vmem:[#allocation1 + $0x8] sm:$0xff pattern:$0x75316420] }
 0x11e   : > { %732 = vst [vmem:[#allocation1] ss:$2 sm:$0xff] %v1950_v8  ;;  %v737_v20 = vld.sshfl [vmem:[#allocation1 + $0x10] sm:$0xff pattern:$0x75316420]  ;;  %v1524_v21 = vpack.i.bf16 %v713_v18, %v1957_v17  ;;  %v1529_v29 = vpack.i.bf16 %v715_v14, %v714_v19  ;;  %v2034_v17 = vand.u32 127, %v272_v24  ;;  %v1477_v24 = vunpack.i.l.bf16 %v2030_v23 }
 0x11f   : > { %757 = vst [vmem:[#allocation1 + $0x10] ss:$2 sm:$0xff] %v752_v16  ;;  %742 = vrot.lane.b32.xlu0 %v737_v20, %s1824_s25 }
 0x120   : > { %1525 = vrot.lane.b32.xlu2 %v1524_v21, %s1814_s9  ;;  %v2039_v31 = vand.u32 15, %v2034_v17 }
 0x122   : > { %vm314_vm7 = vcmp.lt.s32.totalorder %v2039_v31, 15  ;;  %v2062_v1 = vpop.permute.xlu1 %1470  ;;  %vm2633_vm11 = vcmp.ge.s32.totalorder %v2039_v31, 1 }
 0x125   : > { %v735_v25 = vld.sshfl [vmem:[#allocation1] sm:$0xff pattern:$0x75316420]  ;;  %v736_v26 = vld.sshfl [vmem:[#allocation1 + $0x8] sm:$0xff pattern:$0x75316420] }
 0x126   : > { %755 = vst [vmem:[#allocation1] ss:$2 sm:$0xff] %v1950_v8  ;;  %v760_v28 = vld.sshfl [vmem:[#allocation1 + $0x10] sm:$0xff pattern:$0x75316420]  ;;  %v1534_v42 = vpack.i.bf16 %v736_v26, %v735_v25 }
 0x127   : > { %780 = vst [vmem:[#allocation1 + $0x10] ss:$2 sm:$0xff] %v775_v9  ;;  %765 = vrot.lane.b32.xlu1 %v760_v28, %s1825_s26  ;;  %v1478_v9 = vunpack.i.h.bf16 %v2030_v23  ;;  %v2080_v25 = vld [vmem:[#allocation2 + $0x8] sm:$0xf] }
 0x128   : > { %1530 = vrot.lane.b32.xlu2 %v1529_v29, %s1814_s9  ;;  %s1829_s9 = smov 63  }
 0x12a   : > { %v2036_v30 = vpop.permute.xlu2 %1490 }
 0x12b   : > { %v1493_v33 = vunpack.i.h.bf16 %v2036_v30  ;;  %v1492_v34 = vunpack.i.l.bf16 %v2036_v30 }
 0x12d   : > { %v758_v37 = vld.sshfl [vmem:[#allocation1] sm:$0xff pattern:$0x75316420]  ;;  %v759_v38 = vld.sshfl [vmem:[#allocation1 + $0x8] sm:$0xff pattern:$0x75316420]  ;;  %v429_v39 = vsel %vm428_vm6, %v1492_v34, %v1493_v33 }
 0x12e   : > { %778 = vst [vmem:[#allocation1] ss:$2 sm:$0xff] %v1950_v8  ;;  %v783_v41 = vld.sshfl [vmem:[#allocation1 + $0x10] sm:$0xff pattern:$0x75316420]  ;;  %v1539_v43 = vpack.i.bf16 %v759_v38, %v758_v37  ;;  %v433_v45 = vsel %vm314_vm7, %v429_v39, 0.0 }
 0x12f   : > { %802 = vst [vmem:[#allocation1 + $0x10] ss:$2 sm:$0xff] %v2043_v35  ;;  %v513_v46 = vpack.c.bf16 %v433_v45, %v433_v45  ;;  %v360_v45 = vsel %vm359_vm10, %v1477_v24, %v1478_v9 }
 0x130   : > { %1535 = vrot.lane.b32.xlu2 %v1534_v42, %s1824_s25  ;;  %1540 = vrot.lane.b32.xlu0 %v1539_v43, %s1825_s26 }
 0x131   : > { %v528_v47 = vsel %vm526_vm8, %v513_v46, 0 }
 0x132   : > { %538 = vmatpush.bf16.msra.mxu0 %v528_v47  ;;  %v2070_v18 = vpop.permute.xlu1 %1480 }
 0x133   : > { %v1482_v20 = vunpack.i.l.bf16 %v2070_v18 }
 0x135   : > { %v781_v54 = vld.sshfl [vmem:[#allocation1] sm:$0xff pattern:$0x75316420]  ;;  %v782_v55 = vld.sshfl [vmem:[#allocation1 + $0x8] sm:$0xff pattern:$0x75316420] }
 0x136   : > { %800 = vst [vmem:[#allocation1] ss:$2 sm:$0xff] %v1950_v8  ;;  %v805_v56 = vld.sshfl [vmem:[#allocation1 + $0x10] sm:$0xff pattern:$0x75316420]  ;;  %v1549_v57 = vpack.i.bf16 %v783_v41, %v782_v55  ;;  %v1544_v59 = vpack.i.bf16 %v781_v54, %v1961_v22  ;;  %v2067_v22 = vpop.permute.xlu0 %1465  ;;  %v1473_v55 = vunpack.i.h.bf16 %v2062_v1 }
 0x137   : > { %824 = vst [vmem:[#allocation1 + $0x10] ss:$2 sm:$0xff] %v819_v48  ;;  %v1468_v46 = vunpack.i.h.bf16 %v2067_v22  ;;  %v1467_v54 = vunpack.i.l.bf16 %v2067_v22 }
 0x138   : > { %1550 = vrot.lane.b32.xlu1 %v1549_v57, %s1815_s10  ;;  %1545 = vrot.lane.b32.xlu0 %v1544_v59, %s1815_s10  ;;  %s1830_s10 = smov 64  }
 0x13d   : > { %v803_v61 = vld.sshfl [vmem:[#allocation1] sm:$0xff pattern:$0x75316420]  ;;  %v804_v62 = vld.sshfl [vmem:[#allocation1 + $0x8] sm:$0xff pattern:$0x75316420] }
 0x13e   : > { %822 = vst [vmem:[#allocation1] ss:$2 sm:$0xff] %v1950_v8  ;;  %v827_v0 = vld.sshfl [vmem:[#allocation1 + $0x10] sm:$0xff pattern:$0x75316420]  ;;  %v1554_v11 = vpack.i.bf16 %v803_v61, %v1965_v27  ;;  %v1559_v19 = vpack.i.bf16 %v805_v56, %v804_v62  ;;  %v1483_v27 = vunpack.i.h.bf16 %v2070_v18  ;;  %v2076_v21 = vpop.permute.xlu0 %1485  ;;  %v1472_v56 = vunpack.i.l.bf16 %v2062_v1 }
 0x13f   : > { %847 = vst [vmem:[#allocation1 + $0x10] ss:$2 sm:$0xff] %v842_v60  ;;  %v2630_v34 = vunpack.i.h.bf16 %v2076_v21  ;;  %v1487_v37 = vunpack.i.l.bf16 %v2076_v21 }
 0x140   : > { %832 = vrot.lane.b32.xlu0 %v827_v0, %s1826_s30  ;;  %1555 = vrot.lane.b32.xlu2 %v1554_v11, %s1816_s11  ;;  %v383_v39 = vsel %vm382_vm9, %v1482_v20, %v1483_v27  ;;  %v304_v20 = vsel %vm303_vm12, %v1467_v54, %v1468_v46  ;;  %v337_v24 = vsel %vm336_vm13, %v1472_v56, %v1473_v55 }
 0x141   : > { %v387_v60 = vsel %vm314_vm7, %v383_v39, 0.0  ;;  %v406_v61 = vsel %vm405_vm14, %v1487_v37, %v2630_v34 }
 0x142   : > { %v2082_v26 = vpop.permute.xlu2 %1505 }
 0x143   : > { %v2628_v47 = vunpack.i.h.bf16 %v2082_v26  ;;  %v1507_v48 = vunpack.i.l.bf16 %v2082_v26 }
 0x145   : > { %v825_v14 = vld.sshfl [vmem:[#allocation1] sm:$0xff pattern:$0x75316420]  ;;  %v826_v15 = vld.sshfl [vmem:[#allocation1 + $0x8] sm:$0xff pattern:$0x75316420] }
 0x146   : > { %845 = vst [vmem:[#allocation1] ss:$2 sm:$0xff] %v1950_v8  ;;  %v850_v16 = vld.sshfl [vmem:[#allocation1 + $0x10] sm:$0xff pattern:$0x75316420]  ;;  %v1564_v42 = vpack.i.bf16 %v826_v15, %v825_v14  ;;  %v364_v14 = vsel %vm2633_vm11, %v360_v45, 0.0 }
 0x147   : > { %870 = vst [vmem:[#allocation1 + $0x10] ss:$2 sm:$0xff] %v865_v12  ;;  %855 = vrot.lane.b32.xlu1 %v850_v16, %s1827_s6  ;;  %v496_v12 = vsel %vm2626_vm15, %v1507_v48, %v2628_v47  ;;  %v909_v15 = vld [vmem:[#allocation2 + $0x8] sm:$0xf]  ;;  %v410_v16 = vsel %vm2633_vm11, %v406_v61, 0.0  ;;  %v341_v61 = vsel %vm314_vm7, %v337_v24, 0.0 }
 0x148   : > { %1560 = vrot.lane.b32.xlu2 %v1559_v19, %s1816_s11  ;;  %v478_v19 = vrot.slane %v387_v60, 4  ;;  %v507_v54 = vsel %vm500_vm1, %v410_v16, %v496_v12  ;;  %v308_v60 = vsel %vm2633_vm11, %v304_v20, 0.0  ;;  %v932_v12 = vld [vmem:[#allocation2 + $0x8] sm:$0xf]  ;;  %s1831_s11 = smov 61  }
 0x14a   : > { %v2091_v41 = vpop.permute.xlu1 %1495 }
 0x14b   : > { %v1498_v57 = vunpack.i.h.bf16 %v2091_v41  ;;  %v1497_v59 = vunpack.i.l.bf16 %v2091_v41 }
 0x14d   : > { %v848_v28 = vld.sshfl [vmem:[#allocation1] sm:$0xff pattern:$0x75316420]  ;;  %v849_v29 = vld.sshfl [vmem:[#allocation1 + $0x8] sm:$0xff pattern:$0x75316420]  ;;  %v449_v39 = vsel %vm448_vm2, %v1497_v59, %v1498_v57 }
 0x14e   : > { %868 = vst [vmem:[#allocation1] ss:$2 sm:$0xff] %v1950_v8  ;;  %v873_v38 = vld.sshfl [vmem:[#allocation1 + $0x10] sm:$0xff pattern:$0x75316420]  ;;  %v1569_v43 = vpack.i.bf16 %v849_v29, %v848_v28  ;;  %v455_v59 = vrot.slane %v364_v14, 4 }
 0x14f   : > { %892 = vst [vmem:[#allocation1 + $0x10] ss:$2 sm:$0xff] %v2080_v25 }
 0x150   : > { %1565 = vrot.lane.b32.xlu2 %v1564_v42, %s1826_s30  ;;  %1570 = vrot.lane.b32.xlu0 %v1569_v43, %s1827_s6  ;;  %s1373_s30 = sshll.u32 %s1890_s22, 5 }
 0x152   : > { %v2112_v62 = vpop.permute.xlu0 %1500  ;;  %v2149_v20 = vpop.permute.xlu2 %1510 }
 0x153   : > { %v2629_v0 = vunpack.i.h.bf16 %v2112_v62  ;;  %v1502_v11 = vunpack.i.l.bf16 %v2112_v62  ;;  %v1512_v18 = vunpack.i.l.bf16 %v2149_v20 }
 0x155   : > { %v871_v28 = vld.sshfl [vmem:[#allocation1] sm:$0xff pattern:$0x75316420]  ;;  %v872_v29 = vld.sshfl [vmem:[#allocation1 + $0x8] sm:$0xff pattern:$0x75316420]  ;;  %v472_v37 = vsel %vm2632_vm0, %v1502_v11, %v2629_v0 }
 0x156   : > { %890 = vst [vmem:[#allocation1] ss:$2 sm:$0xff] %v1950_v8  ;;  %v895_v42 = vld.sshfl [vmem:[#allocation1 + $0x10] sm:$0xff pattern:$0x75316420]  ;;  %v1579_v43 = vpack.i.bf16 %v873_v38, %v872_v29  ;;  %v1574_v45 = vpack.i.bf16 %v871_v28, %v1969_v32  ;;  %v505_v48 = vsel %vm500_vm1, %v472_v37, %v478_v19  ;;  %v501_v38 = vsel %vm500_vm1, %v308_v60, %v449_v39 }
 0x157   : > { %914 = vst [vmem:[#allocation1 + $0x10] ss:$2 sm:$0xff] %v909_v15  ;;  %v511_v56 = vpack.c.bf16 %v507_v54, %v505_v48  ;;  %v503_v32 = vsel %vm500_vm1, %v341_v61, %v455_v59  ;;  %v2147_v15 = vld [vmem:[#allocation3] sm:$0xf]  ;;  %v2627_v28 = vunpack.i.h.bf16 %v2149_v20  ;;  %v955_v39 = vld [vmem:[#allocation2 + $0x8] sm:$0xf] }
 0x158   : > { %1580 = vrot.lane.b32.xlu2 %v1579_v43, %s1817_s12  ;;  %1575 = vrot.lane.b32.xlu1 %v1574_v45, %s1817_s12  ;;  %v509_v11 = vpack.c.bf16 %v503_v32, %v501_v38  ;;  %v2165_v54 = vld [vmem:[#allocation2 + $0x8] sm:$0xf]  ;;  %s1832_s12 = smov 60  }
 0x159   : > { %539 = vmatpush.bf16.msra.mxu0 %v511_v56  ;;  %v1001_v59 = vld [vmem:[#allocation2 + $0x8] sm:$0xf] }
 0x15d   : > { %v893_v16 = vld.sshfl [vmem:[#allocation1] sm:$0xff pattern:$0x75316420]  ;;  %v894_v19 = vld.sshfl [vmem:[#allocation1 + $0x8] sm:$0xff pattern:$0x75316420]  ;;  %540 = vmatpush.bf16.msra.mxu0 %v509_v11 }
 0x15e   : > { %912 = vst [vmem:[#allocation1] ss:$2 sm:$0xff] %v1950_v8  ;;  %v917_v24 = vld.sshfl [vmem:[#allocation1 + $0x10] sm:$0xff pattern:$0x75316420]  ;;  %v1584_v14 = vpack.i.bf16 %v893_v16, %v1973_v36  ;;  %v1589_v48 = vpack.i.bf16 %v895_v42, %v894_v19 }
 0x15f   : > { %937 = vst [vmem:[#allocation1 + $0x10] ss:$2 sm:$0xff] %v932_v12 }
 0x160   : > { %1363 = vmatmul.msk.bf16.vlgmr.msra.gmra.mxu0 %vm2624_vm3, %v2147_v15  ;;  %922 = vrot.lane.b32.xlu1 %v917_v24, %s1828_s7  ;;  %vm632_vm3 = vcmp.lt.s32.totalorder %v2039_v31, 14 }
 0x161   : > { %v597_v29 = vpop.permute.xlu0 %596  ;;  %1585 = vrot.lane.b32.xlu0 %v1584_v14, %s1818_s13 }
 0x162   : > { %v2161_v37 = vsel %vm2625_vm4, %v2627_v28, %v597_v29 }
 0x165   : > { %v915_v36 = vld.sshfl [vmem:[#allocation1] sm:$0xff pattern:$0x75316420]  ;;  %v916_v43 = vld.sshfl [vmem:[#allocation1 + $0x8] sm:$0xff pattern:$0x75316420] }
 0x166   : > { %935 = vst [vmem:[#allocation1] ss:$2 sm:$0xff] %v1950_v8  ;;  %v940_v45 = vld.sshfl [vmem:[#allocation1 + $0x10] sm:$0xff pattern:$0x75316420]  ;;  %v1594_v12 = vpack.i.bf16 %v916_v43, %v915_v36 }
 0x167   : > { %960 = vst [vmem:[#allocation1 + $0x10] ss:$2 sm:$0xff] %v955_v39 }
 0x169   : > { %1590 = vrot.lane.b32.xlu0 %v1589_v48, %s1818_s13  ;;  %s1833_s13 = smov 112  }
 0x16d   : > { %v938_v56 = vld.sshfl [vmem:[#allocation1] sm:$0xff pattern:$0x75316420]  ;;  %v939_v60 = vld.sshfl [vmem:[#allocation1 + $0x8] sm:$0xff pattern:$0x75316420] }
 0x16e   : > { %958 = vst [vmem:[#allocation1] ss:$2 sm:$0xff] %v1950_v8  ;;  %v963_v61 = vld.sshfl [vmem:[#allocation1 + $0x10] sm:$0xff pattern:$0x75316420]  ;;  %v1599_v11 = vpack.i.bf16 %v939_v60, %v938_v56 }
 0x16f   : > { %983 = vst [vmem:[#allocation1 + $0x10] ss:$2 sm:$0xff] %v2165_v54  ;;  %968 = vrot.lane.b32.xlu2 %v963_v61, %s1829_s9 }
 0x171   : > { %945 = vrot.lane.b32.xlu0 %v940_v45, %s1830_s10 }
 0x175   : > { %v961_v38 = vld.sshfl [vmem:[#allocation1] sm:$0xff pattern:$0x75316420]  ;;  %v962_v32 = vld.sshfl [vmem:[#allocation1 + $0x8] sm:$0xff pattern:$0x75316420] }
 0x176   : > { %981 = vst [vmem:[#allocation1] ss:$2 sm:$0xff] %v1950_v8  ;;  %v986_v42 = vld.sshfl [vmem:[#allocation1 + $0x10] sm:$0xff pattern:$0x75316420]  ;;  %v1604_v14 = vpack.i.bf16 %v962_v32, %v961_v38 }
 0x177   : > { %1006 = vst [vmem:[#allocation1 + $0x10] ss:$2 sm:$0xff] %v1001_v59  ;;  %991 = vrot.lane.b32.xlu1 %v986_v42, %s1831_s11  ;;  %1600 = vrot.lane.b32.xlu2 %v1599_v11, %s1830_s10 }
 0x179   : > { %1595 = vrot.lane.b32.xlu0 %v1594_v12, %s1828_s7 }
 0x17a   : > { %v2171_v16 = vpop.permute.xlu2 %1525 }
 0x17b   : > { %v1528_v45 = vunpack.i.h.bf16 %v2171_v16  ;;  %v1527_v28 = vunpack.i.l.bf16 %v2171_v16 }
 0x17d   : > { %v984_v19 = vld.sshfl [vmem:[#allocation1] sm:$0xff pattern:$0x75316420]  ;;  %v985_v24 = vld.sshfl [vmem:[#allocation1 + $0x8] sm:$0xff pattern:$0x75316420] }
 0x17e   : > { %1004 = vst [vmem:[#allocation1] ss:$2 sm:$0xff] %v1950_v8  ;;  %v1009_v29 = vld.sshfl [vmem:[#allocation1 + $0x10] sm:$0xff pattern:$0x75316420]  ;;  %v1609_v59 = vpack.i.bf16 %v985_v24, %v984_v19 }
 0x17f   : > { %1031 = vst [vmem:[#allocation1 + $0x10] ss:$2 sm:$0xff] %v1989_v51  ;;  %1605 = vrot.lane.b32.xlu1 %v1604_v14, %s1829_s9  ;;  %v274_v51 = vadd.s32 128, %v2034_v17  ;;  %s1264_s9 = scalar_lea.hbm %s2623_s5, %s1373_s30 }
 0x181   : > { %1014 = vrot.lane.b32.xlu0 %v1009_v29, %s1832_s12  ;;  %v2182_v42 = vand.u32 15, %v274_v51 }
 0x182   : > { %v1531_v39 = vpop.permute.xlu2 %1530 }
 0x183   : > { %v1532_v48 = vunpack.i.l.bf16 %v1531_v39  ;;  %v1533_v29 = vunpack.i.h.bf16 %v1531_v39  ;;  %vm633_vm4 = vcmp.lt.s32.totalorder %v2182_v42, 14  ;;  %vm315_vm15 = vcmp.lt.s32.totalorder %v2182_v42, 15 }
 0x184   : > { %vm280_vm0 = vcmp.ge.s32.totalorder %v2182_v42, 1 }
 0x185   : > { %v1007_v36 = vld.sshfl [vmem:[#allocation1] sm:$0xff pattern:$0x75316420]  ;;  %v1008_v43 = vld.sshfl [vmem:[#allocation1 + $0x8] sm:$0xff pattern:$0x75316420]  ;;  %v722_v56 = vsel %vm336_vm13, %v1528_v45, %v1532_v48  ;;  %v2197_v45 = vpop.permute.xlu1 %1515 }
 0x186   : > { %1029 = vst [vmem:[#allocation1] ss:$2 sm:$0xff] %v1950_v8  ;;  %v2178_v60 = vld.sshfl [vmem:[#allocation1 + $0x10] sm:$0xff pattern:$0x75316420]  ;;  %v1614_v61 = vpack.i.bf16 %v1008_v43, %v1007_v36  ;;  %v726_v39 = vsel %vm314_vm7, %v722_v56, 0.0  ;;  %v723_v43 = vsel %vm336_vm13, %v1532_v48, %v1533_v29 }
 0x187   : > { %1061 = vst [vmem:[#allocation1 + $0x11] ss:$2 sm:$0xff] %v2011_v5 }
 0x188   : > { %1615 = vrot.lane.b32.xlu2 %v1614_v61, %s1832_s12 }
 0x189   : > { %1610 = vrot.lane.b32.xlu0 %v1609_v59, %s1831_s11  ;;  %s1267_s11 = sshll.u32 %s1264_s9, 4  ;;  %s1268_s11 = int_to_ptr.hbm [resolvable:$true] %s1267_s11 }
 0x18a   : > { %v1536_v38 = vpop.permute.xlu2 %1535  ;;  %s1750_s12 = sshra.s32 %s1268_s11, 4  ;;  %s1751_s12 = int_to_ptr.hbm [resolvable:$true] %s1750_s12 }
 0x18b   : > { %v1538_v32 = vunpack.i.h.bf16 %v1536_v38  ;;  %v1537_v11 = vunpack.i.l.bf16 %v1536_v38  ;;  %v727_v38 = vsel %vm315_vm15, %v723_v43, 0.0  ;;  %p1757_p3 = scmp.lt.s32.totalorder %s1751_s12, %s2623_s5 }
 0x18d   : > { %v2185_v12 = vld.sshfl [vmem:[#allocation1] sm:$0xff pattern:$0x75316420]  ;;  %v2187_v14 = vld.sshfl [vmem:[#allocation1 + $0x8] sm:$0xff pattern:$0x75316420]  ;;  %v745_v5 = vsel %vm744_vm5, %v1537_v11, %v1538_v32  ;;  %v2222_v29 = vpop.permute.xlu1 %1520 }
 0x18e   : > { %1059 = vst [vmem:[#allocation1 + $0x1] ss:$2 sm:$0xff] %v1950_v8  ;;  %v2191_v17 = vld.sshfl [vmem:[#allocation1 + $0x10] sm:$0xff pattern:$0x75316420]  ;;  %v749_v19 = vsel %vm632_vm3, %v745_v5, 0.0 }
 0x18f   : > { %1089 = vst [vmem:[#allocation1 + $0x10] ss:$2 sm:$0xff] %v2043_v35  ;;  %v1077_v24 = vrot.slane %v749_v19, 4 }
 0x191   : > { %v743_v36 = vpop.permute.xlu0 %742  ;;  %675 = vrot.lane.b32.xlu0 %v2009_v4, %s1833_s13  ;;  %v2206_v61 = vsel %vm500_vm1, %v726_v39, %v1077_v24 }
 0x192   : > { %v746_v35 = vsel %vm744_vm5, %v1538_v32, %v743_v36  ;;  %vm767_vm5 = vcmask 785408  }
 0x193   : > { %v750_v59 = vsel %vm633_vm4, %v746_v35, 0.0 }
 0x194   : > { %v1078_v51 = vrot.slane %v750_v59, 4 }
 0x195   : > { %v2213_v4 = vld.sshfl [vmem:[#allocation1 + $0x8] sm:$0xff pattern:$0x75316420]  ;;  %v1062_v11 = vld.sshfl [vmem:[#allocation1] sm:$0xff pattern:$0x75316420] }
 0x196   : > { %v1619_v56 = vpack.i.bf16 %v1062_v11, %v1977_v40  ;;  %1087 = vst [vmem:[#allocation1] ss:$2 sm:$0xff] %v1950_v8  ;;  %v1092_v48 = vld.sshfl [vmem:[#allocation1 + $0x10] sm:$0xff pattern:$0x75316420]  ;;  %v2218_v32 = vsel %vm500_vm1, %v727_v38, %v1078_v51 }
 0x197   : > { %1134 = vst [vmem:[#allocation1 + $0x11] ss:$2 sm:$0xff] %v2080_v25 }
 0x198   : > { %1620 = vrot.lane.b32.xlu2 %v1619_v56, %s1819_s14 }
 0x199   : > { %v766_v40 = vpop.permute.xlu1 %765 }
 0x19a   : > { %v2224_v5 = vpop.permute.xlu2 %1555 }
 0x19b   : > { %v1558_v35 = vunpack.i.h.bf16 %v2224_v5 }
 0x19d   : > { %v1090_v19 = vld.sshfl [vmem:[#allocation1] sm:$0xff pattern:$0x75316420]  ;;  %v1091_v24 = vld.sshfl [vmem:[#allocation1 + $0x8] sm:$0xff pattern:$0x75316420] }
 0x19e   : > { %v1624_v36 = vpack.i.bf16 %v1090_v19, %v1981_v44  ;;  %v1137_v39 = vld.sshfl [vmem:[#allocation1 + $0x10] sm:$0xff pattern:$0x75316420]  ;;  %1132 = vst [vmem:[#allocation1 + $0x1] ss:$2 sm:$0xff] %v1950_v8  ;;  %v1629_v19 = vpack.i.bf16 %v1092_v48, %v1091_v24 }
 0x19f   : > { %1162 = vst [vmem:[#allocation1 + $0x10] ss:$2 sm:$0xff] %v2165_v54 }
 0x1a0   : > { %1625 = vrot.lane.b32.xlu1 %v1624_v36, %s1820_s15 }
 0x1a2   : > { %v1541_v43 = vpop.permute.xlu0 %1540  ;;  %v2230_v25 = vpop.permute.xlu2 %1560 }
 0x1a3   : > { %v1543_v59 = vunpack.i.h.bf16 %v1541_v43  ;;  %v2631_v51 = vunpack.i.l.bf16 %v2230_v25 }
 0x1a5   : > { %v2237_v44 = vsel %vm382_vm9, %v1558_v35, %v2631_v51  ;;  %v1135_v38 = vld.sshfl [vmem:[#allocation1] sm:$0xff pattern:$0x75316420]  ;;  %v1136_v11 = vld.sshfl [vmem:[#allocation1 + $0x8] sm:$0xff pattern:$0x75316420]  ;;  %v769_v54 = vsel %vm767_vm5, %v1543_v59, %v766_v40  ;;  %v1542_v35 = vunpack.i.l.bf16 %v1541_v43 }
 0x1a6   : > { %v1165_v56 = vld.sshfl [vmem:[#allocation1 + $0x10] sm:$0xff pattern:$0x75316420]  ;;  %v1639_v36 = vpack.i.bf16 %v1135_v38, %v1985_v49  ;;  %1160 = vst [vmem:[#allocation1] ss:$2 sm:$0xff] %v1950_v8  ;;  %v1634_v8 = vpack.i.bf16 %v2015_v7, %v2013_v6  ;;  %v338_v49 = vsel %vm336_vm13, %v1473_v55, %v1527_v28  ;;  %v1644_v38 = vpack.i.bf16 %v1137_v39, %v1136_v11 }
 0x1a7   : > { %1170 = vrot.lane.b32.xlu2 %v1165_v56, %s1834_s17  ;;  %v1659_v56 = vpack.i.bf16 %v2018_v10, %v2021_v13  ;;  %vm2634_vm13 = vcmp.ge.s32.totalorder %v2039_v31, 2  ;;  %v342_v10 = vsel %vm315_vm15, %v338_v49, 0.0 }
 0x1a8   : > { %1630 = vrot.lane.b32.xlu1 %v1629_v19, %s1820_s15  ;;  %1640 = vrot.lane.b32.xlu0 %v1639_v36, %s1821_s16  ;;  %s1836_s15 = smov 126  }
 0x1aa   : > { %v1551_v47 = vpop.permute.xlu1 %1550  ;;  %v1546_v0 = vpop.permute.xlu0 %1545 }
 0x1ab   : > { %v1553_v34 = vunpack.i.h.bf16 %v1551_v47  ;;  %v1552_v40 = vunpack.i.l.bf16 %v1551_v47  ;;  %v1548_v51 = vunpack.i.h.bf16 %v1546_v0  ;;  %v1547_v48 = vunpack.i.l.bf16 %v1546_v0  ;;  %v1566_v0 = vpop.permute.xlu2 %1565 }
 0x1ac   : > { %v768_v47 = vsel %vm767_vm5, %v1542_v35, %v1543_v59  ;;  %v1568_v55 = vunpack.i.h.bf16 %v1566_v0  ;;  %vm834_vm5 = vcmask 752640  }
 0x1ad   : > { %v791_v16 = vsel %vm359_vm10, %v1552_v40, %v1553_v34  ;;  %v790_v24 = vsel %vm359_vm10, %v1548_v51, %v1552_v40  ;;  %v361_v43 = vsel %vm359_vm10, %v1478_v9, %v1547_v48  ;;  %vm565_vm10 = vcmp.ge.s32.totalorder %v2182_v42, 2  ;;  %v1163_v35 = vld.sshfl [vmem:[#allocation1] sm:$0xff pattern:$0x75316420] }
 0x1ae   : > { %v365_v6 = vsel %vm280_vm0, %v361_v43, 0.0  ;;  %v794_v7 = vsel %vm2633_vm11, %v790_v24, 0.0  ;;  %v795_v9 = vsel %vm280_vm0, %v791_v16, 0.0  ;;  %v772_v13 = vsel %vm2634_vm13, %v768_v47, 0.0 }
 0x1af   : > { %1635 = vrot.lane.b32.xlu2 %v1634_v8, %s1833_s13  ;;  %v456_v1 = vrot.slane %v365_v6, 4  ;;  %v1083_v23 = vrot.slane %v794_v7, 4  ;;  %v1084_v34 = vrot.slane %v795_v9, 4  ;;  %v773_v59 = vsel %vm565_vm10, %v769_v54, 0.0  ;;  %s1752_s13 = scalar_lea.hbm %s1751_s12, 32 }
 0x1b0   : > { %1645 = vrot.lane.b32.xlu1 %v1644_v38, %s1821_s16  ;;  %1660 = vrot.lane.b32.xlu0 %v1659_v56, %s1813_s8  ;;  %v1164_v40 = vld.sshfl [vmem:[#allocation1 + $0x8] sm:$0xff pattern:$0x75316420]  ;;  %v1669_v8 = vpack.i.bf16 %v2187_v14, %v2185_v12  ;;  %s1835_s8 = smov 124   ;;  %v1654_v54 = vpack.i.bf16 %v2006_v3, %v2004_v2  ;;  %v1567_v16 = vunpack.i.l.bf16 %v1566_v0  ;;  %vm857_vm11 = vcmask 654336   ;;  %p1753_p0 = scmp.ne.s32.totalorder %s1751_s12, %s1752_s13 }
 0x1b1   : > { %v2276_v28 = vsel %vm500_vm1, %v342_v10, %v456_v1  ;;  %v2279_v39 = vsel %vm500_vm1, %v772_v13, %v1083_v23  ;;  %v2286_v19 = vsel %vm500_vm1, %v773_v59, %v1084_v34  ;;  %v1649_v49 = vpack.i.bf16 %v1164_v40, %v1163_v35 }
 0x1b2   : > { %v833_v51 = vpop.permute.xlu0 %832  ;;  %v1195_v11 = vpack.c.bf16 %v2279_v39, %v2206_v61  ;;  %v1196_v48 = vpack.c.bf16 %v2286_v19, %v2218_v32  ;;  %v1664_v56 = vpack.i.bf16 %v2191_v17, %v2213_v4  ;;  %p1754_p1 = pnand %p1753_p0, %p1907_p5 }
 0x1b3   : > { %v836_v36 = vsel %vm834_vm5, %v1568_v55, %v833_v51  ;;  %v2308_v7 = vpop.permute.xlu2 %1580 }
 0x1b4   : > { %v840_v6 = vsel %vm633_vm4, %v836_v36, 0.0  ;;  %p1755_p2 = pneg %p1754_p1 }
 0x1b7   : > { %652 = vrot.lane.b32.xlu2 %v2001_v63, %s1835_s8  ;;  %v835_v63 = vsel %vm834_vm5, %v1567_v16, %v1568_v55  ;;  %vm2635_vm5 = vcmask 523264  }
 0x1b8   : > { %1670 = vrot.lane.b32.xlu0 %v1669_v8, %s1836_s15  ;;  %1650 = vrot.lane.b32.xlu1 %v1649_v49, %s1834_s17  ;;  %v839_v1 = vsel %vm632_vm3, %v835_v63, 0.0 }
 0x1b9   : > { %v856_v14 = vpop.permute.xlu1 %855 }
 0x1bf   : > { %619 = vrot.lane.b32.xlu2 %v1998_v58, %s1823_s23 }
 0x1c0   : > { %1655 = vrot.lane.b32.xlu1 %v1654_v54, %s1835_s8 }
 0x1c2   : > { %v1571_v24 = vpop.permute.xlu0 %1570 }
 0x1c3   : > { %v1573_v43 = vunpack.i.h.bf16 %v1571_v24  ;;  %v1572_v12 = vunpack.i.l.bf16 %v1571_v24 }
 0x1c5   : > { %v859_v47 = vsel %vm857_vm11, %v1573_v43, %v856_v14  ;;  %v858_v38 = vsel %vm857_vm11, %v1572_v12, %v1573_v43  ;;  %vm1016_vm11 = vcmask 490496  }
 0x1c6   : > { %v862_v2 = vsel %vm2634_vm13, %v858_v38, 0.0  ;;  %v863_v58 = vsel %vm565_vm10, %v859_v47, 0.0  ;;  %vm924_vm13 = vcmask 621568  }
 0x1c7   : > { %v1111_v3 = vrot.slane %v862_v2, 4  ;;  %v1112_v0 = vrot.slane %v863_v58, 4 }
 0x1c8   : > { %1665 = vrot.lane.b32.xlu1 %v1664_v56, %s1819_s14  ;;  %s245_s14 = sand.u32 1, %s1798_s19  }
 0x1c9   : > { %v2314_v17 = vsel %vm500_vm1, %v839_v1, %v1111_v3  ;;  %v2317_v4 = vsel %vm500_vm1, %v840_v6, %v1112_v0  ;;  %v2319_v23 = vpop.permute.xlu2 %968  ;;  %s1360_s16 = sshll.u32 %s245_s14, 5  ;;  %s1253_s22 = scalar_lea.sflag [#allocation5], %s245_s14 }
 0x1ca   : > { %v2325_v34 = vpop.permute.xlu1 %1575  ;;  %s2338_s23 = scalar_lea.vmem [#allocation8], %s1360_s16 }
 0x1cb   : > { %s1265_s10 = sshll.u32 %s2338_s23, 4  ;;  %s1266_s10 = int_to_ptr.vmem [resolvable:$true] %s1265_s10 }
 0x1d0   : > { %1039 = vrot.lane.b32.xlu1 %v2178_v60, %s1836_s15  ;;  %s1756_s15 = scalar_lea.hbm %s2623_s5, 64 }
 0x1d1   : > { %v2330_v51 = vpop.permute.xlu2 %1600  ;;  %p1758_p4 = scmp.lt.s32.totalorder %s1756_s15, %s1752_s13 }
 0x1d2   : > { %v923_v54 = vpop.permute.xlu1 %922  ;;  %v1603_v16 = vunpack.i.h.bf16 %v2330_v51 }
 0x1d3   : > { %v1586_v9 = vpop.permute.xlu0 %1585  ;;  %p1759_p7 = por %p1758_p4, %p1757_p3 }
 0x1d4   : > { %v1587_v10 = vunpack.i.l.bf16 %v1586_v9  ;;  %v1588_v60 = vunpack.i.h.bf16 %v1586_v9 }
 0x1d5   : > { %p1760_p8 = pnand %p1759_p7, %p1755_p2 }
 0x1d6   : > { %v430_v13 = vsel %vm428_vm6, %v1493_v33, %v1587_v10  ;;  %v1522_v10 = vunpack.i.l.bf16 %v2222_v29 }
 0x1d7   : > { %v434_v55 = vsel %vm315_vm15, %v430_v13, 0.0 }
 0x1d8   : > { %v514_v59 = vpack.c.bf16 %v434_v55, %v434_v55 }
 0x1da   : > { %v531_v36 = vsel %vm526_vm8, %v514_v59, 0 }
 0x1db   : > { %v1591_v35 = vpop.permute.xlu0 %1590  ;;  %551 = vmatpush.bf16.msra.mxu1 %v531_v36 }
 0x1dc   : > { %v1592_v40 = vunpack.i.l.bf16 %v1591_v35  ;;  %v1593_v0 = vunpack.i.h.bf16 %v1591_v35 }
 0x1dd   : > { %v542_v30 = vpop.f32.mrf.mxu0 }
 0x1de   : > { %v543_v33 = vadd.f32 %v542_v30, %v2055_v50  ;;  %v902_v8 = vsel %vm428_vm6, %v1588_v60, %v1592_v40  ;;  %v903_v59 = vsel %vm428_vm6, %v1592_v40, %v1593_v0  ;;  %vm2642_vm6 = vcmask 769024  }
 0x1e0   : > { %v559_v49 = vmax.f32 %v543_v33, 0.0 }
 0x1e2   : > { %561 = vst [vmem:[%s2338_s23] sm:$0xff] %v559_v49  ;;  %v1616_v24 = vpop.permute.xlu2 %1615  ;;  %v906_v49 = vsel %vm314_vm7, %v902_v8, 0.0 }
 0x1e3   : > { %v946_v43 = vpop.permute.xlu0 %945  ;;  %v1618_v12 = vunpack.i.h.bf16 %v1616_v24  ;;  %v1617_v14 = vunpack.i.l.bf16 %v1616_v24 }
 0x1e4   : > { %v949_v47 = vsel %vm2635_vm5, %v1603_v16, %v946_v43  ;;  %vm970_vm5 = vcmask 515072   ;;  %v305_v43 = vsel %vm303_vm12, %v1468_v46, %v1522_v10 }
 0x1e5   : > { %v1017_v38 = vsel %vm1016_vm11, %v1617_v14, %v1618_v12  ;;  %v544_v63 = vpop.f32.mrf.mxu0  ;;  %v309_v46 = vsel %vm280_vm0, %v305_v43, 0.0 }
 0x1e6   : > { %v1021_v56 = vsel %vm632_vm3, %v1017_v38, 0.0 }
 0x1e7   : > { %v1203_v2 = vpack.c.bf16 %v1021_v56, %v1021_v56 }
 0x1e9   : > { %v2347_v58 = vpop.permute.xlu1 %991  ;;  %v1217_v3 = vsel %vm526_vm8, %v1203_v2, 0 }
 0x1ea   : > { %1223 = vmatpush.bf16.msra.mxu2 %v1217_v3 }
 0x1eb   : > { %v1596_v6 = vpop.permute.xlu0 %1595 }
 0x1ec   : > { %v1598_v1 = vunpack.i.h.bf16 %v1596_v6  ;;  %v1597_v9 = vunpack.i.l.bf16 %v1596_v6 }
 0x1ee   : > { %v926_v13 = vsel %vm924_vm13, %v1598_v1, %v923_v54  ;;  %v925_v55 = vsel %vm924_vm13, %v1597_v9, %v1598_v1  ;;  %v907_v54 = vsel %vm315_vm15, %v903_v59, 0.0  ;;  %vm2646_vm13 = vcmask 637952  }
 0x1ef   : > { %v929_v36 = vsel %vm632_vm3, %v925_v55, 0.0  ;;  %v930_v60 = vsel %vm633_vm4, %v926_v13, 0.0  ;;  %v1557_v13 = vunpack.i.l.bf16 %v2224_v5  ;;  %v1563_v55 = vunpack.i.h.bf16 %v2230_v25 }
 0x1f0   : > { %v1150_v30 = vrot.slane %v929_v36, 4  ;;  %v1151_v33 = vrot.slane %v930_v60, 4  ;;  %v2639_v60 = vunpack.i.l.bf16 %v2230_v25  ;;  %v816_v5 = vsel %vm314_vm7, %v2237_v44, 0.0 }
 0x1f1   : > { %v2356_v35 = vpop.permute.xlu1 %1605  ;;  %v1583_v44 = vunpack.i.h.bf16 %v2308_v7 }
 0x1f2   : > { %v1608_v24 = vunpack.i.h.bf16 %v2356_v35  ;;  %v2363_v40 = vpop.permute.xlu2 %1620  ;;  %v2369_v14 = vsel %vm500_vm1, %v906_v49, %v1150_v30  ;;  %v2372_v38 = vsel %vm500_vm1, %v907_v54, %v1151_v33  ;;  %v813_v30 = vsel %vm382_vm9, %v2639_v60, %v1563_v55 }
 0x1f3   : > { %v1015_v63 = vpop.permute.xlu0 %1014  ;;  %v1622_v8 = vunpack.i.l.bf16 %v2363_v40  ;;  %v1577_v33 = vunpack.i.l.bf16 %v2325_v34  ;;  %v817_v43 = vsel %vm315_vm15, %v813_v30, 0.0  ;;  %v1578_v55 = vunpack.i.h.bf16 %v2325_v34 }
 0x1f4   : > { %v972_v56 = vsel %vm970_vm5, %v1608_v24, %v2319_v23  ;;  %v1018_v2 = vsel %vm1016_vm11, %v1618_v12, %v1015_v63  ;;  %v953_v12 = vsel %vm565_vm10, %v949_v47, 0.0  ;;  %v384_v47 = vsel %vm382_vm9, %v1483_v27, %v1557_v13  ;;  %vm2644_vm9 = vmmov %vm2642_vm6 }
 0x1f5   : > { %v1022_v22 = vsel %vm633_vm4, %v1018_v2, 0.0  ;;  %v450_v3 = vsel %vm448_vm2, %v1498_v57, %v1622_v8  ;;  %v976_v0 = vsel %vm280_vm0, %v972_v56, 0.0  ;;  %v388_v49 = vsel %vm315_vm15, %v384_v47, 0.0 }
 0x1f6   : > { %v1204_v6 = vpack.c.bf16 %v1022_v22, %v1022_v22  ;;  %v2390_v1 = vsel %vm500_vm1, %v309_v46, %v450_v3  ;;  %v1157_v23 = vrot.slane %v976_v0, 4  ;;  %v479_v25 = vrot.slane %v388_v49, 4 }
 0x1f7   : > { %v510_v9 = vpack.c.bf16 %v2276_v28, %v2390_v1  ;;  %v1105_v8 = vrot.slane %v816_v5, 4  ;;  %v2640_v3 = vunpack.i.h.bf16 %v2076_v21  ;;  %v1582_v13 = vunpack.i.l.bf16 %v2308_v7 }
 0x1f8   : > { %v1220_v10 = vsel %vm526_vm8, %v1204_v6, 0  ;;  %v2398_v41 = vsel %vm500_vm1, %v953_v12, %v1157_v23  ;;  %v2641_v23 = vunpack.i.h.bf16 %v2112_v62  ;;  %vm2643_vm8 = vmmov %vm2642_vm6  ;;  %v2645_v60 = vunpack.i.h.bf16 %v2082_v26 }
 0x1f9   : > { %1236 = vmatpush.bf16.msra.mxu3 %v1220_v10  ;;  %v407_v0 = vsel %vm405_vm14, %v2640_v3, %v1577_v33  ;;  %v1106_v10 = vrot.slane %v817_v43, 4  ;;  %v1518_v26 = vunpack.i.h.bf16 %v2197_v45  ;;  %v1607_v43 = vunpack.i.l.bf16 %v2356_v35 }
 0x1fa   : > { %v411_v21 = vsel %vm280_vm0, %v407_v0, 0.0  ;;  %vm2648_vm11 = vcmask 1039360  }
 0x1fb   : > { %v2400_v57 = vpop.permute.xlu0 %1610 }
 0x201   : > { %v2421_v56 = vpop.permute.xlu2 %1170 }
 0x203   : > { %v2404_v59 = vpop.permute.xlu0 %675 }
 0x212   : > { %v1626_v36 = vpop.permute.xlu1 %1625 }
 0x213   : > { %v1627_v54 = vunpack.i.l.bf16 %v1626_v36  ;;  %v1628_v2 = vunpack.i.h.bf16 %v1626_v36 }
 0x215   : > { %v473_v12 = vsel %vm2642_vm6, %v2641_v23, %v1627_v54  ;;  %v1517_v54 = vunpack.i.l.bf16 %v2197_v45  ;;  %vm621_vm6 = vcmask 1022976  }
 0x216   : > { %v506_v7 = vsel %vm500_vm1, %v473_v12, %v479_v25  ;;  %v881_v25 = vsel %vm405_vm14, %v1582_v13, %v1583_v44 }
 0x21a   : > { %v1631_v27 = vpop.permute.xlu1 %1630  ;;  %v1641_v63 = vpop.permute.xlu0 %1640 }
 0x21b   : > { %v1633_v22 = vunpack.i.h.bf16 %v1631_v27  ;;  %v1632_v46 = vunpack.i.l.bf16 %v1631_v27  ;;  %v1642_v6 = vunpack.i.l.bf16 %v1641_v63  ;;  %v1643_v23 = vunpack.i.h.bf16 %v1641_v63 }
 0x21d   : > { %v1099_v36 = vsel %vm2643_vm8, %v1628_v2, %v1632_v46  ;;  %v1100_v47 = vsel %vm2644_vm9, %v1632_v46, %v1633_v22  ;;  %v497_v30 = vsel %vm2646_vm13, %v2645_v60, %v1642_v6  ;;  %v1613_v22 = vunpack.i.h.bf16 %v2400_v57 }
 0x21e   : > { %v2440_v62 = vsel %vm500_vm1, %v1099_v36, %v1105_v8  ;;  %v2443_v33 = vsel %vm500_vm1, %v1100_v47, %v1106_v10  ;;  %v508_v34 = vsel %vm500_vm1, %v411_v21, %v497_v30  ;;  %v2647_v8 = vunpack.i.h.bf16 %v2149_v20 }
 0x21f   : > { %v1197_v49 = vpack.c.bf16 %v2314_v17, %v2440_v62  ;;  %v1198_v5 = vpack.c.bf16 %v2317_v4, %v2443_v33  ;;  %v512_v27 = vpack.c.bf16 %v508_v34, %v506_v7  ;;  %v1612_v46 = vunpack.i.l.bf16 %v2400_v57 }
 0x220   : > { %v599_v2 = vsel %vm2648_vm11, %v1512_v18, %v2647_v8  ;;  %v880_v6 = vsel %vm405_vm14, %v1578_v55, %v1582_v13  ;;  %vm993_vm8 = vcmask 498688   ;;  %v971_v20 = vsel %vm970_vm5, %v1607_v43, %v1608_v24  ;;  %v1636_v55 = vpop.permute.xlu2 %1635  ;;  %vm2651_vm11 = vmmov %vm2646_vm13 }
 0x221   : > { %552 = vmatpush.bf16.msra.mxu1 %v512_v27  ;;  %v622_v18 = vsel %vm621_vm6, %v1517_v54, %v1518_v26  ;;  %v885_v57 = vsel %vm280_vm0, %v881_v25, 0.0  ;;  %vm2649_vm9 = vcmp.ge.s32.totalorder %v2039_v31, 1  ;;  %v1602_v13 = vunpack.i.l.bf16 %v2330_v51  ;;  %v1206_v27 = vld [vmem:[%s2622_s4] sm:$0xff] }
 0x222   : > { %v1646_v3 = vpop.permute.xlu1 %1645  ;;  %v2460_v0 = vpop.permute.xlu0 %1660  ;;  %v603_v44 = vsel %vm2649_vm9, %v599_v2, 0.0  ;;  %vm2650_vm14 = vmmov %vm2649_vm9  ;;  %v995_v36 = vsel %vm993_vm8, %v1613_v22, %v2347_v58  ;;  %v994_v47 = vsel %vm993_vm8, %v1612_v46, %v1613_v22  ;;  %vm2654_vm8 = vcmp.ge.s32.totalorder %v2039_v31, 2  ;;  %1209 = vperm.xlu2 %1674, %v1206_v27  }
 0x223   : > { %v1648_v12 = vunpack.i.h.bf16 %v1646_v3  ;;  %v1647_v10 = vunpack.i.l.bf16 %v1646_v3  ;;  %v884_v63 = vsel %vm2650_vm14, %v880_v6, 0.0  ;;  %vm2652_vm5 = vmmov %vm2649_vm9  ;;  %v1025_v54 = vrot.slane %v603_v44, 4 }
 0x224   : > { %v975_v30 = vsel %vm2652_vm5, %v971_v20, 0.0  ;;  %vm2653_vm9 = vcmask 293888   ;;  %v998_v58 = vsel %vm314_vm7, %v994_v47, 0.0  ;;  %v999_v28 = vsel %vm315_vm15, %v995_v36, 0.0 }
 0x225   : > { %v1144_v35 = vsel %vm2646_vm13, %v1643_v23, %v1647_v10  ;;  %v1145_v24 = vsel %vm2651_vm11, %v1647_v10, %v1648_v12  ;;  %553 = vmatpush.bf16.msra.mxu1 %v510_v9  ;;  %v580_v1 = vsel %vm2654_vm8, %v1991_v52, 0.0  ;;  %v626_v9 = vsel %vm314_vm7, %v622_v18, 0.0  ;;  %vm2656_vm7 = vmmov %vm2654_vm8 }
 0x226   : > { %v1183_v21 = vsel %vm500_vm1, %v884_v63, %v1144_v35  ;;  %v1184_v60 = vsel %vm500_vm1, %v885_v57, %v1145_v24  ;;  %vm2655_vm14 = vcmask 523264   ;;  %v1156_v43 = vrot.slane %v975_v30, 4  ;;  %vm2657_vm8 = vmmov %vm2656_vm7 }
 0x227   : > { %v1199_v7 = vpack.c.bf16 %v2369_v14, %v1183_v21  ;;  %v1200_v34 = vpack.c.bf16 %v2372_v38, %v1184_v60  ;;  %vm1172_vm13 = vcmask 506880   ;;  %vm1041_vm11 = vcmask 1031168  }
 0x228   : > { %1364 = vmatmul.msk.bf16.vlgmr.msra.gmra.mxu1 %vm2653_vm9, %v2147_v15  ;;  %v948_v15 = vsel %vm2655_vm14, %v1602_v13, %v1603_v16  ;;  %v1179_v22 = vrot.slane %v998_v58, 4  ;;  %v1180_v46 = vrot.slane %v999_v28, 4  ;;  %v1048_v3 = vrot.slane %v626_v9, 4  ;;  %v653_v44 = vpop.permute.xlu2 %652 }
 0x229   : > { %v2510_v51 = vsel %vm500_vm1, %v580_v1, %v1025_v54  ;;  %v952_v16 = vsel %vm2656_vm7, %v948_v15, 0.0  ;;  %v1638_v35 = vunpack.i.h.bf16 %v1636_v55  ;;  %v1637_v24 = vunpack.i.l.bf16 %v1636_v55 }
 0x22a   : > { %v2499_v14 = vpop.permute.xlu0 %1670  ;;  %v1651_v38 = vpop.permute.xlu1 %1650  ;;  %v1187_v10 = vsel %vm500_vm1, %v952_v16, %v1156_v43  ;;  %vm677_vm5 = vcmask 916480   ;;  %vm654_vm9 = vcmask 1014784   ;;  %v1663_v54 = vunpack.i.h.bf16 %v2460_v0 }
 0x22b   : > { %v1673_v8 = vunpack.i.h.bf16 %v2499_v14  ;;  %v1672_v52 = vunpack.i.l.bf16 %v2499_v14  ;;  %v1653_v2 = vunpack.i.h.bf16 %v1651_v38  ;;  %v1652_v25 = vunpack.i.l.bf16 %v1651_v38 }
 0x22c   : > { %v679_v60 = vsel %vm677_vm5, %v1638_v35, %v2404_v59  ;;  %v678_v30 = vsel %vm677_vm5, %v1637_v24, %v1638_v35  ;;  %v1523_v58 = vunpack.i.h.bf16 %v2222_v29  ;;  %v604_v33 = vsel %vm280_vm0, %v2161_v37, 0.0 }
 0x22d   : > { %v1173_v6 = vsel %vm1172_vm13, %v1652_v25, %v1653_v2  ;;  %v1174_v23 = vsel %vm1172_vm13, %v1653_v2, %v2421_v56  ;;  %v1042_v12 = vsel %vm1041_vm11, %v1672_v52, %v1673_v8  ;;  %v682_v59 = vsel %vm2657_vm8, %v678_v30, 0.0 }
 0x22e   : > { %v1189_v20 = vsel %vm500_vm1, %v1173_v6, %v1179_v22  ;;  %v1190_v18 = vsel %vm500_vm1, %v1174_v23, %v1180_v46  ;;  %v2522_v57 = vsel %vm500_vm1, %v1042_v12, %v1048_v3  ;;  %v683_v55 = vsel %vm565_vm10, %v679_v60, 0.0 }
 0x22f   : > { %v1201_v13 = vpack.c.bf16 %v1189_v20, %v1187_v10  ;;  %v1202_v63 = vpack.c.bf16 %v1190_v18, %v2398_v41  ;;  %v1191_v56 = vpack.c.bf16 %v2522_v57, %v2510_v51  ;;  %v1662_v41 = vunpack.i.l.bf16 %v2460_v0  ;;  %v1205_v51 = vld [vmem:[#allocation6] sm:$0xf] }
 0x230   : > { %v620_v9 = vpop.permute.xlu2 %619  ;;  %v1623_v0 = vunpack.i.h.bf16 %v2363_v40  ;;  %v1026_v19 = vrot.slane %v604_v33, 4  ;;  %v581_v25 = vsel %vm565_vm10, %v1993_v53, 0.0 }
 0x231   : > { %1224 = vmatpush.bf16.msra.mxu2 %v1201_v13  ;;  %1237 = vmatpush.bf16.msra.mxu3 %v1202_v63  ;;  %v623_v40 = vsel %vm621_vm6, %v1518_v26, %v620_v9 }
 0x232   : > { %v1656_v36 = vpop.permute.xlu1 %1655  ;;  %v627_v32 = vsel %vm315_vm15, %v623_v40, 0.0  ;;  %v1116_v22 = vsel %vm500_vm1, %v581_v25, %v1026_v19  ;;  %vm1212_vm15 = vcmask 818176  }
 0x233   : > { %v1658_v47 = vunpack.i.h.bf16 %v1656_v36  ;;  %v1657_v21 = vunpack.i.l.bf16 %v1656_v36 }
 0x235   : > { %1225 = vmatpush.bf16.msra.mxu2 %v1199_v7  ;;  %1238 = vmatpush.bf16.msra.mxu3 %v1200_v34  ;;  %v655_v28 = vsel %vm654_vm9, %v1657_v21, %v1658_v47  ;;  %v656_v1 = vsel %vm654_vm9, %v1658_v47, %v653_v44  ;;  %v700_v7 = vsel %vm303_vm12, %v1523_v58, %v1662_v41 }
 0x236   : > { %v701_v34 = vsel %vm303_vm12, %v1662_v41, %v1663_v54  ;;  %v659_v62 = vsel %vm632_vm3, %v655_v28, 0.0  ;;  %v660_v4 = vsel %vm633_vm4, %v656_v1, 0.0  ;;  %vm2658_vm12 = vcmp.ge.s32.totalorder %v2039_v31, 1 }
 0x237   : > { %v704_v15 = vsel %vm2658_vm12, %v700_v7, 0.0  ;;  %v705_v37 = vsel %vm280_vm0, %v701_v34, 0.0 }
 0x239   : > { %1226 = vmatpush.bf16.msra.mxu2 %v1197_v49  ;;  %1239 = vmatpush.bf16.msra.mxu3 %v1198_v5  ;;  %v1054_v49 = vrot.slane %v682_v59, 4  ;;  %v1055_v5 = vrot.slane %v683_v55, 4 }
 0x23a   : > { %v1666_v29 = vpop.permute.xlu1 %1665 }
 0x23b   : > { %v1668_v38 = vunpack.i.h.bf16 %v1666_v29  ;;  %v1667_v17 = vunpack.i.l.bf16 %v1666_v29  ;;  %v1119_v26 = vsel %vm500_vm1, %v659_v62, %v1054_v49  ;;  %v1120_v61 = vsel %vm500_vm1, %v660_v4, %v1055_v5 }
 0x23d   : > { %1227 = vmatpush.bf16.msra.mxu2 %v1195_v11  ;;  %1240 = vmatpush.bf16.msra.mxu3 %v1196_v48  ;;  %v1071_v43 = vsel %vm448_vm2, %v1623_v0, %v1667_v17  ;;  %v1072_v45 = vsel %vm448_vm2, %v1667_v17, %v1668_v38  ;;  %v1049_v48 = vrot.slane %v627_v32, 4 }
 0x23e   : > { %v1121_v27 = vsel %vm500_vm1, %v704_v15, %v1071_v43  ;;  %v1122_v39 = vsel %vm500_vm1, %v705_v37, %v1072_v45 }
 0x23f   : > { %v1193_v31 = vpack.c.bf16 %v1121_v27, %v1119_v26  ;;  %v1194_v11 = vpack.c.bf16 %v1122_v39, %v1120_v61 }
 0x241   : > { %1228 = vmatpush.bf16.msra.mxu2 %v1193_v31  ;;  %1241 = vmatpush.bf16.msra.mxu3 %v1194_v11 }
 0x242   : > { %v1040_v52 = vpop.permute.xlu1 %1039 }
 0x243   : > { %v1043_v2 = vsel %vm1041_vm11, %v1673_v8, %v1040_v52 }
 0x244   : > { %v1118_v46 = vsel %vm500_vm1, %v1043_v2, %v1049_v48 }
 0x245   : > { %1229 = vmatpush.bf16.msra.mxu2 %v1191_v56  ;;  %v1192_v3 = vpack.c.bf16 %v1118_v46, %v1116_v22 }
 0x247   : > { %1242 = vmatpush.bf16.msra.mxu3 %v1192_v3 }
 0x248   : > { %1365 = vmatmul.msk.bf16.vlgmr.msra.gmra.mxu2 %vm1212_vm15, %v1205_v51 }
 0x24a   : > { %1366 = vmatmul.msk.bf16.vlgmr.msra.gmra.mxu3 %vm1212_vm15, %v1205_v51 }
 0x27c   : > { %v1210_v42 = vpop.permute.xlu2 %1209 }
 0x2a5   : > { %v555_v14 = vpop.f32.mrf.mxu1 }
 0x2a6   : > { %v556_v8 = vadd.f32 %v555_v14, %v2055_v50 }
 0x2a8   : > { %v560_v16 = vmax.f32 %v556_v8, 0.0 }
 0x2aa   : > { %562 = vst [vmem:[%s2338_s23 + $0x8] sm:$0xff] %v560_v16 }
 0x2ad   : > { %v557_v53 = vpop.f32.mrf.mxu1 }
 0x2cb   : > { %v1231_v6 = vpop.f32.mrf.mxu2 }
 0x2cc   : > { %v1232_v23 = vadd.f32 %v1231_v6, %v1210_v42 }
 0x2cd   : > { %v1244_v12 = vpop.f32.mrf.mxu3 }
 0x2ce   : > { %v1248_v10 = vmax.f32 %v1232_v23, 0.0  ;;  %v1245_v20 = vadd.f32 %v1244_v12, %v1210_v42 }
 0x2d0   : > { %1250 = vst [vmem:[%s2338_s23 + $0x10] sm:$0xff] %v1248_v10  ;;  %v1249_v50 = vmax.f32 %v1245_v20, 0.0 }
 0x2d2   : > { %1251 = vst [vmem:[%s2338_s23 + $0x18] sm:$0xff] %v1249_v50 }
 0x2d3   : > { %v1233_v18 = vpop.f32.mrf.mxu2 }
 0x2d4   : > { %1763 = shalt.err (!%p1760_p8)
}
 0x2d5   : > { %s1837_s14 = smov 256   ;;  %s1838_s23 = smov 16   ;;  %v1246_v57 = vpop.f32.mrf.mxu3 }
 0x2d6   : > { %1382 = dma.vmem_to_hbm [thread:$0]  (%p1907_p5), %s1266_s10, 512, %s1268_s11, %s1253_s22, %s1837_s14, %s1837_s14, %s1838_s23  }
 0x2d7 PF: > { %p1399_p9 = scmp.ge.s32.totalorder %s1806_s21, 2  ;;  %s1282_s26 = sand.u32 1, %s1794_s18  }
 0x2d8   : > { %s1283_s30 = scalar_lea.sflag [#allocation5], %s1282_s26 }
 0x2d9   : > { %p1392_p10 = pnand %p1399_p9, %p1911_p6 }
 0x2db   : > { %p1393_p11 = pneg %p1392_p10 }
 0x2dd   : > { %1789 = dma.done.wait (%p1393_p11), %s1283_s30, 512  }
 0x2de   : > { %1791 = vsyncadd (%p1393_p11), %s1283_s30, 4294966784  ;;  %p17_p12 = scmp.ge.s32.totalorder %s1894_s24, 4   ;;  %s2659_s18 = smov %s1798_s19 }
 0x2df   : > { %s2660_s19 = smov %s1802_s20  ;;  %s2661_s20 = smov %s1905_s27 }
 0x2e0   : > { %s2662_s21 = smov %s1894_s24  ;;  %19 = sbr.rel (!%p17_p12) target bundleno = 5 (0x5), region = 121 }
 0x2e5   :  { %1289 = vsyncpa [#allocation4], 1 }
 0x2e6   :  { %1291 = vsyncpa [#allocation4 + $0x1], 1 }
 0x2e7   :  { %1292 = vsyncpa [#allocation7], 1 }
 0x2e8   :  { %1293 = vsyncpa [#allocation5], 1 }
 0x2e9   :  { %1295 = vsyncpa [#allocation5 + $0x1], 1 }

</bundles_post_ra>
